<compile_context>
chip_gen: v7x
topology: tpu7x:2x2x1
jax: 0.10.0
libtpu: 0.0.40
codegen_flags: <defaults>
</compile_context>

<pallas_src>
import functools
import math

import jax
import jax.numpy as jnp
from jax.experimental import pallas as pl
from jax.experimental.pallas import tpu as pltpu


def _round_up(x, m):
    return ((x + m - 1) // m) * m


# ----------------------------- in-kernel helpers ----------------------------

def _tap_stack(v, *, lane_w, ks):
    """Stack the ks*ks shifted taps of a (C, HW) map along sublanes.

    Returns (ks*ks*C, HW) f32 where rows [tap*C:(tap+1)*C] hold v shifted by
    (dy, dx) = (tap//ks - ks//2, tap%ks - ks//2); wrap-around is NOT yet
    masked (caller multiplies by the precomputed boundary mask).
    """
    c, hw = v.shape
    half = ks // 2
    pieces = []
    for tap in range(ks * ks):
        dy = tap // ks - half
        dx = tap % ks - half
        shift = (-(dy * lane_w + dx)) % hw
        pieces.append(pltpu.roll(v, shift, axis=1) if shift else v)
    return jnp.concatenate(pieces, axis=0)


def _masked_taps_bf16(v, mask, *, lane_w, ks):
    """im2col stack, boundary-masked (f32), cast to bf16 for the MXU."""
    return (_tap_stack(v, lane_w=lane_w, ks=ks) * mask).astype(jnp.bfloat16)


# ----------------------------- fused sequence kernel ------------------------

def _convgru_seq_kernel(*refs, hidden_units, hc, out_ch, lane_w, ks):
    """One (batch, timestep) grid point: all GRU cells + toOut head.

    refs layout (inputs, then outputs, then scratch):
      [0]                       x block            (1, 1, cx0, HW) bf16
      per cell kk (6 each)      mask_xh, w1, w2, wc1, wc2, bias
      [1 + 6*HU]                mask_cand          (ks*ks*hc, HW) f32
      [2 + 6*HU]                mask_head          (9*hc, HW)     f32
      [3+6*HU : 7+6*HU]         head w1, w2, w3, bias
      [n_in]                    out block          (1, 1, out_ch, HW)
      [n_in+1 :]                per-cell hidden-state VMEM scratch (hc, HW) f32
    """
    n_in = 1 + 6 * hidden_units + 2 + 4
    x_ref = refs[0]
    cell_refs = [refs[1 + 6 * kk: 7 + 6 * kk] for kk in range(hidden_units)]
    mask_c_ref = refs[1 + 6 * hidden_units]
    mask_o_ref = refs[2 + 6 * hidden_units]
    hw1_ref, hw2_ref, hw3_ref, hb_ref = refs[3 + 6 * hidden_units: n_in]
    out_ref = refs[n_in]
    h_refs = refs[n_in + 1:]

    t_step = pl.program_id(1)

    # New sequence for this batch element: zero all recurrent states (f32,
    # kept in VMEM for the whole sequence -> no bf16 drift, no HBM traffic).
    @pl.when(t_step == 0)
    def _():
        for h_ref in h_refs:
            h_ref[...] = jnp.zeros_like(h_ref)

    mask_c = mask_c_ref[...]

    cur = x_ref[0, 0].astype(jnp.float32)                    # (cx0, HW)
    for kk in range(hidden_units):
        mask_xh_ref, w1_ref, w2_ref, wc1_ref, wc2_ref, b_ref = cell_refs[kk]
        bias = b_ref[...]                                    # (12*hc, 1) f32
        h_prev = h_refs[kk][...]                             # (hc, HW)  f32

        # fused i2h/h2h stage 1: one im2col of [x ; H], one matmul.
        v = jnp.concatenate([cur, h_prev], axis=0)
        taps = _masked_taps_bf16(v, mask_xh_ref[...], lane_w=lane_w, ks=ks)
        g1 = jnp.dot(w1_ref[...], taps,
                     preferred_element_type=jnp.float32) + bias[:5 * hc]
        # fused stage 2 (block-diagonal 1x1): rows [0:3hc] = i2h, [3hc:5hc] = h2h.
        g2 = jnp.dot(w2_ref[...], jnp.tanh(g1).astype(jnp.bfloat16),
                     preferred_element_type=jnp.float32) + bias[5 * hc:10 * hc]

        reset = jax.nn.sigmoid(g2[:hc] + g2[3 * hc:4 * hc])
        update = jax.nn.sigmoid(g2[hc:2 * hc] + g2[4 * hc:5 * hc])

        # h2candidate(reset * H): 3x3 -> tanh -> 1x1
        taps_c = _masked_taps_bf16(reset * h_prev, mask_c, lane_w=lane_w, ks=ks)
        c1 = jnp.dot(wc1_ref[...], taps_c,
                     preferred_element_type=jnp.float32) + bias[10 * hc:11 * hc]
        c2 = jnp.dot(wc2_ref[...], jnp.tanh(c1).astype(jnp.bfloat16),
                     preferred_element_type=jnp.float32) + bias[11 * hc:12 * hc]

        candidate = jnp.tanh(g2[2 * hc:3 * hc] + c2)
        h_new = (1.0 - update) * candidate + update * h_prev
        h_refs[kk][...] = h_new
        cur = h_new

    # toOut head: 1x1 -> tanh -> 1x1 -> tanh -> 3x3, then sigmoid (squash_out)
    hb = hb_ref[...]                                          # (2*hc+out_ch, 1)
    t1 = jnp.tanh(jnp.dot(hw1_ref[...], cur.astype(jnp.bfloat16),
                          preferred_element_type=jnp.float32) + hb[:hc])
    t2 = jnp.tanh(jnp.dot(hw2_ref[...], t1.astype(jnp.bfloat16),
                          preferred_element_type=jnp.float32) + hb[hc:2 * hc])
    taps_o = _masked_taps_bf16(t2, mask_o_ref[...], lane_w=lane_w, ks=3)
    y = jnp.dot(hw3_ref[...], taps_o,
                preferred_element_type=jnp.float32) + hb[2 * hc:2 * hc + out_ch]
    out_ref[0, 0] = jax.nn.sigmoid(y).astype(out_ref.dtype)


# ----------------------------- masks (plain JAX) ----------------------------

def make_tap_masks(H, W, ks):
    """(ks*ks, H*W) f32: 1.0 where tap (dy, dx) stays inside the image."""
    half = ks // 2
    yy, xx = jnp.meshgrid(jnp.arange(H), jnp.arange(W), indexing="ij")
    yy = yy.reshape(-1)
    xx = xx.reshape(-1)
    rows = []
    for tap in range(ks * ks):
        dy = tap // ks - half
        dx = tap % ks - half
        valid = ((yy + dy >= 0) & (yy + dy < H) &
                 (xx + dx >= 0) & (xx + dx < W))
        rows.append(valid.astype(jnp.float32))
    return jnp.stack(rows, axis=0)


def expand_tap_masks(m, C):
    """(K, HW) -> (K*C, HW): each tap row repeated C times (tap-major)."""
    return jnp.repeat(m, C, axis=0)


# ----------------------------- pallas_call wrapper ---------------------------

def _bcast_spec(a):
    nd = a.ndim
    return pl.BlockSpec(a.shape, lambda b, t: (0,) * nd)


def convgru_forward(in_sequence, params, *, hidden_units, hidden_channels,
                    kernel_size):
    """ConvGRU.forward, divergence=False path (future=0, no dropout/noise)."""
    B, T, cin, H, W = in_sequence.shape
    HW = H * W
    hc = hidden_channels
    out_ch = cin                       # toOut out_channels when div_mode=False
    assert hc % 8 == 0, "hidden_channels must be a multiple of 8 (sublane tiling)"
    cin_pad = _round_up(cin, 8)

    # channel-first, spatially flattened, zero-padded to 8 channels, bf16 on HBM
    x = in_sequence.reshape(B, T, cin, HW)
    if cin_pad != cin:
        x = jnp.concatenate(
            [x, jnp.zeros((B, T, cin_pad - cin, HW), x.dtype)], axis=2)
    x = x.astype(jnp.bfloat16)

    base_cell = make_tap_masks(H, W, kernel_size)
    base_head = make_tap_masks(H, W, 3)     # toOut's last conv is always 3x3
    mask_cand = expand_tap_masks(base_cell, hc)
    mask_head = expand_tap_masks(base_head, hc)

    inputs = [x]
    in_specs = [pl.BlockSpec((1, 1, cin_pad, HW), lambda b, t: (b, t, 0, 0))]
    for kk in range(hidden_units):
        cx = cin_pad if kk == 0 else hc
        mask_xh = expand_tap_masks(base_cell, cx + hc)
        cell = params["cells"][kk]
        arrs = [mask_xh, cell["w1"], cell["w2"], cell["wc1"], cell["wc2"],
                cell["b"]]
        inputs += arrs
        in_specs += [_bcast_spec(a) for a in arrs]
    head = params["to_out"]
    for a in (mask_cand, mask_head, head["w1"], head["w2"], head["w3"],
              head["b"]):
        inputs.append(a)
        in_specs.append(_bcast_spec(a))

    kernel = functools.partial(_convgru_seq_kernel, hidden_units=hidden_units,
                               hc=hc, out_ch=out_ch, lane_w=W, ks=kernel_size)

    out = pl.pallas_call(
        kernel,
        out_shape=jax.ShapeDtypeStruct((B, T, out_ch, HW), jnp.float32),
        grid=(B, T),
        in_specs=in_specs,
        out_specs=pl.BlockSpec((1, 1, out_ch, HW), lambda b, t: (b, t, 0, 0)),
        scratch_shapes=[pltpu.VMEM((hc, HW), jnp.float32)
                        for _ in range(hidden_units)],
        compiler_params=pltpu.CompilerParams(
            dimension_semantics=("parallel", "arbitrary"),
            vmem_limit_bytes=32 * 1024 * 1024),
    )(*inputs)

    return out.reshape(B, T, out_ch, H, W)


# ----------------------------- deterministic params --------------------------

def _conv_init(key, cout, cin, kh, kw):
    """PyTorch-default-init Conv2d params (f32)."""
    kw_key, kb_key = jax.random.split(key)
    bound = 1.0 / math.sqrt(cin * kh * kw)
    w = jax.random.uniform(kw_key, (cout, cin, kh, kw), jnp.float32, -bound, bound)
    b = jax.random.uniform(kb_key, (cout,), jnp.float32, -bound, bound)
    return w, b


def _conv_to_cols(w):
    """(Cout, Cin, kh, kw) -> (Cout, kh*kw, Cin): tap-major, then cin."""
    cout, cin, kh, kw = w.shape
    return jnp.transpose(w, (0, 2, 3, 1)).reshape(cout, kh * kw, cin)


def init_cell_params(key, cin_real, cx, hc, ks):
    """Packed ConvGRUCell_parallel params; cx = padded x-channel count."""
    keys = jax.random.split(key, 6)
    i2h_w1, i2h_b1 = _conv_init(keys[0], 3 * hc, cin_real, ks, ks)
    i2h_w2, i2h_b2 = _conv_init(keys[1], 3 * hc, 3 * hc, 1, 1)
    h2h_w1, h2h_b1 = _conv_init(keys[2], 2 * hc, hc, ks, ks)
    h2h_w2, h2h_b2 = _conv_init(keys[3], 2 * hc, 2 * hc, 1, 1)
    c_w1, c_b1 = _conv_init(keys[4], hc, hc, ks, ks)
    c_w2, c_b2 = _conv_init(keys[5], hc, hc, 1, 1)

    C_total = cx + hc
    # combined stage-1 weight on the stacked [x ; H]: (5hc, ks*ks*C_total),
    # columns ordered (tap, channel); x channels first (zero for pad), then H.
    blk = jnp.zeros((5 * hc, ks * ks, C_total), jnp.float32)
    blk = blk.at[:3 * hc, :, :cin_real].set(_conv_to_cols(i2h_w1))
    blk = blk.at[3 * hc:, :, cx:cx + hc].set(_conv_to_cols(h2h_w1))
    w1 = blk.reshape(5 * hc, ks * ks * C_total)

    # combined stage-2 1x1 weight: block-diagonal (5hc, 5hc)
    w2 = jnp.zeros((5 * hc, 5 * hc), jnp.float32)
    w2 = w2.at[:3 * hc, :3 * hc].set(i2h_w2[:, :, 0, 0])
    w2 = w2.at[3 * hc:, 3 * hc:].set(h2h_w2[:, :, 0, 0])

    wc1 = _conv_to_cols(c_w1).reshape(hc, ks * ks * hc)
    wc2 = c_w2[:, :, 0, 0]

    # one bias slab: [stage1 i2h|h2h, stage2 i2h|h2h, cand1, cand2]
    b = jnp.concatenate([i2h_b1, h2h_b1, i2h_b2, h2h_b2, c_b1, c_b2]
                        ).reshape(-1, 1)

    return {"w1": w1.astype(jnp.bfloat16), "w2": w2.astype(jnp.bfloat16),
            "wc1": wc1.astype(jnp.bfloat16), "wc2": wc2.astype(jnp.bfloat16),
            "b": b}


def init_head_params(key, hc, out_ch):
    keys = jax.random.split(key, 3)
    w1, b1 = _conv_init(keys[0], hc, hc, 1, 1)
    w2, b2 = _conv_init(keys[1], hc, hc, 1, 1)
    w3, b3 = _conv_init(keys[2], out_ch, hc, 3, 3)
    return {"w1": w1[:, :, 0, 0].astype(jnp.bfloat16),
            "w2": w2[:, :, 0, 0].astype(jnp.bfloat16),
            "w3": _conv_to_cols(w3).reshape(out_ch, 9 * hc).astype(jnp.bfloat16),
            "b": jnp.concatenate([b1, b2, b3]).reshape(-1, 1)}


# ----------------------------- main ------------------------------------------

if __name__ == "__main__":
    # Small config consistent with the module: hidden_units=2,
    # input_channels=2, hidden_channels=8, kernel_size=3, padding_mode='zeros',
    # divergence=False, seq len 3, 16x16 frames.
    B, T, CIN, H, W = 2, 3, 2, 16, 16
    HIDDEN_UNITS, HIDDEN_CHANNELS, KS = 2, 8, 3
    CIN_PAD = _round_up(CIN, 8)

    key = jax.random.PRNGKey(0)
    k_x, k_p = jax.random.split(key)
    x = jax.random.normal(k_x, (B, T, CIN, H, W), jnp.float32)

    param_keys = jax.random.split(k_p, HIDDEN_UNITS + 1)
    cells = []
    for kk in range(HIDDEN_UNITS):
        cin_real = CIN if kk == 0 else HIDDEN_CHANNELS
        cx = CIN_PAD if kk == 0 else HIDDEN_CHANNELS
        cells.append(init_cell_params(param_keys[kk], cin_real, cx,
                                      HIDDEN_CHANNELS, KS))
    params = {"cells": cells,
              "to_out": init_head_params(param_keys[-1], HIDDEN_CHANNELS, CIN)}

    fwd = jax.jit(functools.partial(convgru_forward,
                                    hidden_units=HIDDEN_UNITS,
                                    hidden_channels=HIDDEN_CHANNELS,
                                    kernel_size=KS))
    out = fwd(x, params)
    jax.block_until_ready(out)

    assert out.shape == (B, T, CIN, H, W)
    assert bool(jnp.all(jnp.isfinite(out)))
    print("KERNEL_OK")
</pallas_src>

<mosaic_0001>
module attributes {stable_mosaic.version = 11 : i64} {
  func.func @_convgru_seq_kernel(%arg0: i32, %arg1: i32, %arg2: memref<1x1x8x256xbf16, #tpu.memory_space<vmem>>, %arg3: memref<144x256xf32, #tpu.memory_space<vmem>>, %arg4: memref<40x144xbf16, #tpu.memory_space<vmem>>, %arg5: memref<40x40xbf16, #tpu.memory_space<vmem>>, %arg6: memref<8x72xbf16, #tpu.memory_space<vmem>>, %arg7: memref<8x8xbf16, #tpu.memory_space<vmem>>, %arg8: memref<96x1xf32, #tpu.memory_space<vmem>>, %arg9: memref<144x256xf32, #tpu.memory_space<vmem>>, %arg10: memref<40x144xbf16, #tpu.memory_space<vmem>>, %arg11: memref<40x40xbf16, #tpu.memory_space<vmem>>, %arg12: memref<8x72xbf16, #tpu.memory_space<vmem>>, %arg13: memref<8x8xbf16, #tpu.memory_space<vmem>>, %arg14: memref<96x1xf32, #tpu.memory_space<vmem>>, %arg15: memref<72x256xf32, #tpu.memory_space<vmem>>, %arg16: memref<72x256xf32, #tpu.memory_space<vmem>>, %arg17: memref<8x8xbf16, #tpu.memory_space<vmem>>, %arg18: memref<8x8xbf16, #tpu.memory_space<vmem>>, %arg19: memref<2x72xbf16, #tpu.memory_space<vmem>>, %arg20: memref<18x1xf32, #tpu.memory_space<vmem>>, %arg21: memref<1x1x2x256xf32, #tpu.memory_space<vmem>>, %arg22: memref<8x256xf32, #tpu.memory_space<vmem>>, %arg23: memref<8x256xf32, #tpu.memory_space<vmem>>) attributes {dimension_semantics = [#tpu.dimension_semantics<parallel>, #tpu.dimension_semantics<arbitrary>], iteration_bounds = array<i64: 2, 3>, scalar_prefetch = 0 : i64, scratch_operands = 2 : i64, tpu.core_type = #tpu.core_type<tc>, window_params = [{transform_indices = @transform_0, window_bounds = array<i64: 1, 1, 8, 256>}, {pipeline_mode = #tpu.pipeline_mode<synchronous>, transform_indices = @transform_1, window_bounds = array<i64: 144, 256>}, {pipeline_mode = #tpu.pipeline_mode<synchronous>, transform_indices = @transform_2, window_bounds = array<i64: 40, 144>}, {pipeline_mode = #tpu.pipeline_mode<synchronous>, transform_indices = @transform_3, window_bounds = array<i64: 40, 40>}, {pipeline_mode = #tpu.pipeline_mode<synchronous>, transform_indices = @transform_4, window_bounds = array<i64: 8, 72>}, {pipeline_mode = #tpu.pipeline_mode<synchronous>, transform_indices = @transform_5, window_bounds = array<i64: 8, 8>}, {pipeline_mode = #tpu.pipeline_mode<synchronous>, transform_indices = @transform_6, window_bounds = array<i64: 96, 1>}, {pipeline_mode = #tpu.pipeline_mode<synchronous>, transform_indices = @transform_7, window_bounds = array<i64: 144, 256>}, {pipeline_mode = #tpu.pipeline_mode<synchronous>, transform_indices = @transform_8, window_bounds = array<i64: 40, 144>}, {pipeline_mode = #tpu.pipeline_mode<synchronous>, transform_indices = @transform_9, window_bounds = array<i64: 40, 40>}, {pipeline_mode = #tpu.pipeline_mode<synchronous>, transform_indices = @transform_10, window_bounds = array<i64: 8, 72>}, {pipeline_mode = #tpu.pipeline_mode<synchronous>, transform_indices = @transform_11, window_bounds = array<i64: 8, 8>}, {pipeline_mode = #tpu.pipeline_mode<synchronous>, transform_indices = @transform_12, window_bounds = array<i64: 96, 1>}, {pipeline_mode = #tpu.pipeline_mode<synchronous>, transform_indices = @transform_13, window_bounds = array<i64: 72, 256>}, {pipeline_mode = #tpu.pipeline_mode<synchronous>, transform_indices = @transform_14, window_bounds = array<i64: 72, 256>}, {pipeline_mode = #tpu.pipeline_mode<synchronous>, transform_indices = @transform_15, window_bounds = array<i64: 8, 8>}, {pipeline_mode = #tpu.pipeline_mode<synchronous>, transform_indices = @transform_16, window_bounds = array<i64: 8, 8>}, {pipeline_mode = #tpu.pipeline_mode<synchronous>, transform_indices = @transform_17, window_bounds = array<i64: 2, 72>}, {pipeline_mode = #tpu.pipeline_mode<synchronous>, transform_indices = @transform_18, window_bounds = array<i64: 18, 1>}, {transform_indices = @transform_19, window_bounds = array<i64: 1, 1, 2, 256>}]} {
    %c0_i32 = arith.constant 0 : i32
    %0 = arith.cmpi eq, %arg1, %c0_i32 : i32
    %1 = arith.extui %0 : i1 to i32
    %c0_i32_0 = arith.constant 0 : i32
    %2 = arith.cmpi ne, %1, %c0_i32_0 : i32
    scf.if %2 {
      %cst_101 = arith.constant 0.000000e+00 : f32
      %199 = vector.broadcast %cst_101 : f32 to vector<8x256xf32>
      %c0_102 = arith.constant 0 : index
      %c0_103 = arith.constant 0 : index
      %200 = vector.load %arg22[%c0_102, %c0_103] : memref<8x256xf32, #tpu.memory_space<vmem>>, vector<8x256xf32>
      tpu.vector_store %arg22[%c0_102, %c0_103], %199 {strides = array<i32>} : memref<8x256xf32, #tpu.memory_space<vmem>>, vector<8x256xf32>,
      %cst_104 = arith.constant 0.000000e+00 : f32
      %201 = vector.broadcast %cst_104 : f32 to vector<8x256xf32>
      %c0_105 = arith.constant 0 : index
      %c0_106 = arith.constant 0 : index
      %202 = vector.load %arg23[%c0_105, %c0_106] : memref<8x256xf32, #tpu.memory_space<vmem>>, vector<8x256xf32>
      tpu.vector_store %arg23[%c0_105, %c0_106], %201 {strides = array<i32>} : memref<8x256xf32, #tpu.memory_space<vmem>>, vector<8x256xf32>,
    } else {
    }
    %c0 = arith.constant 0 : index
    %c0_1 = arith.constant 0 : index
    %3 = vector.load %arg15[%c0, %c0_1] : memref<72x256xf32, #tpu.memory_space<vmem>>, vector<72x256xf32>
    %c0_2 = arith.constant 0 : index
    %c0_3 = arith.constant 0 : index
    %c0_4 = arith.constant 0 : index
    %c0_5 = arith.constant 0 : index
    %4 = vector.load %arg2[%c0_2, %c0_3, %c0_4, %c0_5] : memref<1x1x8x256xbf16, #tpu.memory_space<vmem>>, vector<1x1x8x256xbf16>
    %5 = vector.shape_cast %4 : vector<1x1x8x256xbf16> to vector<8x256xbf16>
    %6 = arith.extf %5 : vector<8x256xbf16> to vector<8x256xf32>
    %c0_6 = arith.constant 0 : index
    %c0_7 = arith.constant 0 : index
    %7 = vector.load %arg8[%c0_6, %c0_7] : memref<96x1xf32, #tpu.memory_space<vmem>>, vector<96x1xf32>
    %c0_8 = arith.constant 0 : index
    %c0_9 = arith.constant 0 : index
    %8 = vector.load %arg22[%c0_8, %c0_9] : memref<8x256xf32, #tpu.memory_space<vmem>>, vector<8x256xf32>
    %9 = tpu.concatenate %6, %8 in 0 : vector<8x256xf32>, vector<8x256xf32> -> vector<16x256xf32>
    %c0_10 = arith.constant 0 : index
    %c0_11 = arith.constant 0 : index
    %10 = vector.load %arg3[%c0_10, %c0_11] : memref<144x256xf32, #tpu.memory_space<vmem>>, vector<144x256xf32>
    %c17_i32 = arith.constant 17 : i32
    %11 = tpu.dynamic_rotate %9 by %c17_i32 dim 1 : vector<16x256xf32>, i32 -> vector<16x256xf32>
    %c16_i32 = arith.constant 16 : i32
    %12 = tpu.dynamic_rotate %9 by %c16_i32 dim 1 : vector<16x256xf32>, i32 -> vector<16x256xf32>
    %c15_i32 = arith.constant 15 : i32
    %13 = tpu.dynamic_rotate %9 by %c15_i32 dim 1 : vector<16x256xf32>, i32 -> vector<16x256xf32>
    %c1_i32 = arith.constant 1 : i32
    %14 = tpu.dynamic_rotate %9 by %c1_i32 dim 1 : vector<16x256xf32>, i32 -> vector<16x256xf32>
    %c255_i32 = arith.constant 255 : i32
    %15 = tpu.dynamic_rotate %9 by %c255_i32 dim 1 : vector<16x256xf32>, i32 -> vector<16x256xf32>
    %c241_i32 = arith.constant 241 : i32
    %16 = tpu.dynamic_rotate %9 by %c241_i32 dim 1 : vector<16x256xf32>, i32 -> vector<16x256xf32>
    %c240_i32 = arith.constant 240 : i32
    %17 = tpu.dynamic_rotate %9 by %c240_i32 dim 1 : vector<16x256xf32>, i32 -> vector<16x256xf32>
    %c239_i32 = arith.constant 239 : i32
    %18 = tpu.dynamic_rotate %9 by %c239_i32 dim 1 : vector<16x256xf32>, i32 -> vector<16x256xf32>
    %19 = tpu.concatenate %11, %12, %13, %14, %9, %15, %16, %17, %18 in 0 : vector<16x256xf32>, vector<16x256xf32>, vector<16x256xf32>, vector<16x256xf32>, vector<16x256xf32>, vector<16x256xf32>, vector<16x256xf32>, vector<16x256xf32>, vector<16x256xf32> -> vector<144x256xf32>
    %20 = arith.mulf %19, %10 : vector<144x256xf32>
    %21 = arith.truncf %20 : vector<144x256xf32> to vector<144x256xbf16>
    %c0_12 = arith.constant 0 : index
    %c0_13 = arith.constant 0 : index
    %22 = vector.load %arg4[%c0_12, %c0_13] : memref<40x144xbf16, #tpu.memory_space<vmem>>, vector<40x144xbf16>
    %cst = arith.constant dense<0.000000e+00> : vector<40x256xf32>
    %23 = tpu.matmul %22, %21, %cst {dimension_numbers = #tpu.dot_dimension_numbers<[1], [0], [0], [1], [0, 0, 1, 1], [], []>} : vector<40x144xbf16>, vector<144x256xbf16>, vector<40x256xf32> -> vector<40x256xf32>
    %24 = vector.extract_strided_slice %7 {offsets = [0, 0], sizes = [40, 1], strides = [1, 1]} : vector<96x1xf32> to vector<40x1xf32>
    %25 = vector.broadcast %24 : vector<40x1xf32> to vector<40x256xf32>
    %26 = arith.addf %23, %25 : vector<40x256xf32>
    %c0_14 = arith.constant 0 : index
    %c0_15 = arith.constant 0 : index
    %27 = vector.load %arg5[%c0_14, %c0_15] : memref<40x40xbf16, #tpu.memory_space<vmem>>, vector<40x40xbf16>
    %28 = math.tanh %26 : vector<40x256xf32>
    %29 = arith.truncf %28 : vector<40x256xf32> to vector<40x256xbf16>
    %cst_16 = arith.constant dense<0.000000e+00> : vector<40x256xf32>
    %30 = tpu.matmul %27, %29, %cst_16 {dimension_numbers = #tpu.dot_dimension_numbers<[1], [0], [0], [1], [0, 0, 1, 1], [], []>} : vector<40x40xbf16>, vector<40x256xbf16>, vector<40x256xf32> -> vector<40x256xf32>
    %31 = vector.extract_strided_slice %7 {offsets = [40, 0], sizes = [40, 1], strides = [1, 1]} : vector<96x1xf32> to vector<40x1xf32>
    %32 = vector.broadcast %31 : vector<40x1xf32> to vector<40x256xf32>
    %33 = arith.addf %30, %32 : vector<40x256xf32>
    %34 = vector.extract_strided_slice %33 {offsets = [0, 0], sizes = [8, 256], strides = [1, 1]} : vector<40x256xf32> to vector<8x256xf32>
    %35 = vector.extract_strided_slice %33 {offsets = [24, 0], sizes = [8, 256], strides = [1, 1]} : vector<40x256xf32> to vector<8x256xf32>
    %36 = arith.addf %34, %35 : vector<8x256xf32>
    %37 = arith.negf %36 : vector<8x256xf32>
    %38 = math.exp %37 : vector<8x256xf32>
    %cst_17 = arith.constant 1.000000e+00 : f32
    %39 = vector.broadcast %cst_17 : f32 to vector<8x256xf32>
    %40 = arith.addf %39, %38 : vector<8x256xf32>
    %41 = arith.divf %39, %40 : vector<8x256xf32>
    %42 = vector.extract_strided_slice %33 {offsets = [8, 0], sizes = [8, 256], strides = [1, 1]} : vector<40x256xf32> to vector<8x256xf32>
    %43 = vector.extract_strided_slice %33 {offsets = [32, 0], sizes = [8, 256], strides = [1, 1]} : vector<40x256xf32> to vector<8x256xf32>
    %44 = arith.addf %42, %43 : vector<8x256xf32>
    %45 = arith.negf %44 : vector<8x256xf32>
    %46 = math.exp %45 : vector<8x256xf32>
    %cst_18 = arith.constant 1.000000e+00 : f32
    %47 = vector.broadcast %cst_18 : f32 to vector<8x256xf32>
    %48 = arith.addf %47, %46 : vector<8x256xf32>
    %49 = arith.divf %47, %48 : vector<8x256xf32>
    %50 = arith.mulf %41, %8 : vector<8x256xf32>
    %c17_i32_19 = arith.constant 17 : i32
    %51 = tpu.dynamic_rotate %50 by %c17_i32_19 dim 1 : vector<8x256xf32>, i32 -> vector<8x256xf32>
    %c16_i32_20 = arith.constant 16 : i32
    %52 = tpu.dynamic_rotate %50 by %c16_i32_20 dim 1 : vector<8x256xf32>, i32 -> vector<8x256xf32>
    %c15_i32_21 = arith.constant 15 : i32
    %53 = tpu.dynamic_rotate %50 by %c15_i32_21 dim 1 : vector<8x256xf32>, i32 -> vector<8x256xf32>
    %c1_i32_22 = arith.constant 1 : i32
    %54 = tpu.dynamic_rotate %50 by %c1_i32_22 dim 1 : vector<8x256xf32>, i32 -> vector<8x256xf32>
    %c255_i32_23 = arith.constant 255 : i32
    %55 = tpu.dynamic_rotate %50 by %c255_i32_23 dim 1 : vector<8x256xf32>, i32 -> vector<8x256xf32>
    %c241_i32_24 = arith.constant 241 : i32
    %56 = tpu.dynamic_rotate %50 by %c241_i32_24 dim 1 : vector<8x256xf32>, i32 -> vector<8x256xf32>
    %c240_i32_25 = arith.constant 240 : i32
    %57 = tpu.dynamic_rotate %50 by %c240_i32_25 dim 1 : vector<8x256xf32>, i32 -> vector<8x256xf32>
    %c239_i32_26 = arith.constant 239 : i32
    %58 = tpu.dynamic_rotate %50 by %c239_i32_26 dim 1 : vector<8x256xf32>, i32 -> vector<8x256xf32>
    %59 = tpu.concatenate %51, %52, %53, %54, %50, %55, %56, %57, %58 in 0 : vector<8x256xf32>, vector<8x256xf32>, vector<8x256xf32>, vector<8x256xf32>, vector<8x256xf32>, vector<8x256xf32>, vector<8x256xf32>, vector<8x256xf32>, vector<8x256xf32> -> vector<72x256xf32>
    %60 = arith.mulf %59, %3 : vector<72x256xf32>
    %61 = arith.truncf %60 : vector<72x256xf32> to vector<72x256xbf16>
    %c0_27 = arith.constant 0 : index
    %c0_28 = arith.constant 0 : index
    %62 = vector.load %arg6[%c0_27, %c0_28] : memref<8x72xbf16, #tpu.memory_space<vmem>>, vector<8x72xbf16>
    %cst_29 = arith.constant dense<0.000000e+00> : vector<8x256xf32>
    %63 = tpu.matmul %62, %61, %cst_29 {dimension_numbers = #tpu.dot_dimension_numbers<[1], [0], [0], [1], [0, 0, 1, 1], [], []>} : vector<8x72xbf16>, vector<72x256xbf16>, vector<8x256xf32> -> vector<8x256xf32>
    %64 = vector.extract_strided_slice %7 {offsets = [80, 0], sizes = [8, 1], strides = [1, 1]} : vector<96x1xf32> to vector<8x1xf32>
    %65 = vector.broadcast %64 : vector<8x1xf32> to vector<8x256xf32>
    %66 = arith.addf %63, %65 : vector<8x256xf32>
    %c0_30 = arith.constant 0 : index
    %c0_31 = arith.constant 0 : index
    %67 = vector.load %arg7[%c0_30, %c0_31] : memref<8x8xbf16, #tpu.memory_space<vmem>>, vector<8x8xbf16>
    %68 = math.tanh %66 : vector<8x256xf32>
    %69 = arith.truncf %68 : vector<8x256xf32> to vector<8x256xbf16>
    %cst_32 = arith.constant dense<0.000000e+00> : vector<8x256xf32>
    %70 = tpu.matmul %67, %69, %cst_32 {dimension_numbers = #tpu.dot_dimension_numbers<[1], [0], [0], [1], [0, 0, 1, 1], [], []>} : vector<8x8xbf16>, vector<8x256xbf16>, vector<8x256xf32> -> vector<8x256xf32>
    %71 = vector.extract_strided_slice %7 {offsets = [88, 0], sizes = [8, 1], strides = [1, 1]} : vector<96x1xf32> to vector<8x1xf32>
    %72 = vector.broadcast %71 : vector<8x1xf32> to vector<8x256xf32>
    %73 = arith.addf %70, %72 : vector<8x256xf32>
    %74 = vector.extract_strided_slice %33 {offsets = [16, 0], sizes = [8, 256], strides = [1, 1]} : vector<40x256xf32> to vector<8x256xf32>
    %75 = arith.addf %74, %73 : vector<8x256xf32>
    %76 = math.tanh %75 : vector<8x256xf32>
    %cst_33 = arith.constant 1.000000e+00 : f32
    %77 = vector.broadcast %cst_33 : f32 to vector<8x256xf32>
    %78 = arith.subf %77, %49 : vector<8x256xf32>
    %79 = arith.mulf %78, %76 : vector<8x256xf32>
    %80 = arith.mulf %49, %8 : vector<8x256xf32>
    %81 = arith.addf %79, %80 : vector<8x256xf32>
    %c0_34 = arith.constant 0 : index
    %c0_35 = arith.constant 0 : index
    %82 = vector.load %arg22[%c0_34, %c0_35] : memref<8x256xf32, #tpu.memory_space<vmem>>, vector<8x256xf32>
    tpu.vector_store %arg22[%c0_34, %c0_35], %81 {strides = array<i32>} : memref<8x256xf32, #tpu.memory_space<vmem>>, vector<8x256xf32>,
    %c0_36 = arith.constant 0 : index
    %c0_37 = arith.constant 0 : index
    %83 = vector.load %arg14[%c0_36, %c0_37] : memref<96x1xf32, #tpu.memory_space<vmem>>, vector<96x1xf32>
    %c0_38 = arith.constant 0 : index
    %c0_39 = arith.constant 0 : index
    %84 = vector.load %arg23[%c0_38, %c0_39] : memref<8x256xf32, #tpu.memory_space<vmem>>, vector<8x256xf32>
    %85 = tpu.concatenate %81, %84 in 0 : vector<8x256xf32>, vector<8x256xf32> -> vector<16x256xf32>
    %c0_40 = arith.constant 0 : index
    %c0_41 = arith.constant 0 : index
    %86 = vector.load %arg9[%c0_40, %c0_41] : memref<144x256xf32, #tpu.memory_space<vmem>>, vector<144x256xf32>
    %c17_i32_42 = arith.constant 17 : i32
    %87 = tpu.dynamic_rotate %85 by %c17_i32_42 dim 1 : vector<16x256xf32>, i32 -> vector<16x256xf32>
    %c16_i32_43 = arith.constant 16 : i32
    %88 = tpu.dynamic_rotate %85 by %c16_i32_43 dim 1 : vector<16x256xf32>, i32 -> vector<16x256xf32>
    %c15_i32_44 = arith.constant 15 : i32
    %89 = tpu.dynamic_rotate %85 by %c15_i32_44 dim 1 : vector<16x256xf32>, i32 -> vector<16x256xf32>
    %c1_i32_45 = arith.constant 1 : i32
    %90 = tpu.dynamic_rotate %85 by %c1_i32_45 dim 1 : vector<16x256xf32>, i32 -> vector<16x256xf32>
    %c255_i32_46 = arith.constant 255 : i32
    %91 = tpu.dynamic_rotate %85 by %c255_i32_46 dim 1 : vector<16x256xf32>, i32 -> vector<16x256xf32>
    %c241_i32_47 = arith.constant 241 : i32
    %92 = tpu.dynamic_rotate %85 by %c241_i32_47 dim 1 : vector<16x256xf32>, i32 -> vector<16x256xf32>
    %c240_i32_48 = arith.constant 240 : i32
    %93 = tpu.dynamic_rotate %85 by %c240_i32_48 dim 1 : vector<16x256xf32>, i32 -> vector<16x256xf32>
    %c239_i32_49 = arith.constant 239 : i32
    %94 = tpu.dynamic_rotate %85 by %c239_i32_49 dim 1 : vector<16x256xf32>, i32 -> vector<16x256xf32>
    %95 = tpu.concatenate %87, %88, %89, %90, %85, %91, %92, %93, %94 in 0 : vector<16x256xf32>, vector<16x256xf32>, vector<16x256xf32>, vector<16x256xf32>, vector<16x256xf32>, vector<16x256xf32>, vector<16x256xf32>, vector<16x256xf32>, vector<16x256xf32> -> vector<144x256xf32>
    %96 = arith.mulf %95, %86 : vector<144x256xf32>
    %97 = arith.truncf %96 : vector<144x256xf32> to vector<144x256xbf16>
    %c0_50 = arith.constant 0 : index
    %c0_51 = arith.constant 0 : index
    %98 = vector.load %arg10[%c0_50, %c0_51] : memref<40x144xbf16, #tpu.memory_space<vmem>>, vector<40x144xbf16>
    %cst_52 = arith.constant dense<0.000000e+00> : vector<40x256xf32>
    %99 = tpu.matmul %98, %97, %cst_52 {dimension_numbers = #tpu.dot_dimension_numbers<[1], [0], [0], [1], [0, 0, 1, 1], [], []>} : vector<40x144xbf16>, vector<144x256xbf16>, vector<40x256xf32> -> vector<40x256xf32>
    %100 = vector.extract_strided_slice %83 {offsets = [0, 0], sizes = [40, 1], strides = [1, 1]} : vector<96x1xf32> to vector<40x1xf32>
    %101 = vector.broadcast %100 : vector<40x1xf32> to vector<40x256xf32>
    %102 = arith.addf %99, %101 : vector<40x256xf32>
    %c0_53 = arith.constant 0 : index
    %c0_54 = arith.constant 0 : index
    %103 = vector.load %arg11[%c0_53, %c0_54] : memref<40x40xbf16, #tpu.memory_space<vmem>>, vector<40x40xbf16>
    %104 = math.tanh %102 : vector<40x256xf32>
    %105 = arith.truncf %104 : vector<40x256xf32> to vector<40x256xbf16>
    %cst_55 = arith.constant dense<0.000000e+00> : vector<40x256xf32>
    %106 = tpu.matmul %103, %105, %cst_55 {dimension_numbers = #tpu.dot_dimension_numbers<[1], [0], [0], [1], [0, 0, 1, 1], [], []>} : vector<40x40xbf16>, vector<40x256xbf16>, vector<40x256xf32> -> vector<40x256xf32>
    %107 = vector.extract_strided_slice %83 {offsets = [40, 0], sizes = [40, 1], strides = [1, 1]} : vector<96x1xf32> to vector<40x1xf32>
    %108 = vector.broadcast %107 : vector<40x1xf32> to vector<40x256xf32>
    %109 = arith.addf %106, %108 : vector<40x256xf32>
    %110 = vector.extract_strided_slice %109 {offsets = [0, 0], sizes = [8, 256], strides = [1, 1]} : vector<40x256xf32> to vector<8x256xf32>
    %111 = vector.extract_strided_slice %109 {offsets = [24, 0], sizes = [8, 256], strides = [1, 1]} : vector<40x256xf32> to vector<8x256xf32>
    %112 = arith.addf %110, %111 : vector<8x256xf32>
    %113 = arith.negf %112 : vector<8x256xf32>
    %114 = math.exp %113 : vector<8x256xf32>
    %cst_56 = arith.constant 1.000000e+00 : f32
    %115 = vector.broadcast %cst_56 : f32 to vector<8x256xf32>
    %116 = arith.addf %115, %114 : vector<8x256xf32>
    %117 = arith.divf %115, %116 : vector<8x256xf32>
    %118 = vector.extract_strided_slice %109 {offsets = [8, 0], sizes = [8, 256], strides = [1, 1]} : vector<40x256xf32> to vector<8x256xf32>
    %119 = vector.extract_strided_slice %109 {offsets = [32, 0], sizes = [8, 256], strides = [1, 1]} : vector<40x256xf32> to vector<8x256xf32>
    %120 = arith.addf %118, %119 : vector<8x256xf32>
    %121 = arith.negf %120 : vector<8x256xf32>
    %122 = math.exp %121 : vector<8x256xf32>
    %cst_57 = arith.constant 1.000000e+00 : f32
    %123 = vector.broadcast %cst_57 : f32 to vector<8x256xf32>
    %124 = arith.addf %123, %122 : vector<8x256xf32>
    %125 = arith.divf %123, %124 : vector<8x256xf32>
    %126 = arith.mulf %117, %84 : vector<8x256xf32>
    %c17_i32_58 = arith.constant 17 : i32
    %127 = tpu.dynamic_rotate %126 by %c17_i32_58 dim 1 : vector<8x256xf32>, i32 -> vector<8x256xf32>
    %c16_i32_59 = arith.constant 16 : i32
    %128 = tpu.dynamic_rotate %126 by %c16_i32_59 dim 1 : vector<8x256xf32>, i32 -> vector<8x256xf32>
    %c15_i32_60 = arith.constant 15 : i32
    %129 = tpu.dynamic_rotate %126 by %c15_i32_60 dim 1 : vector<8x256xf32>, i32 -> vector<8x256xf32>
    %c1_i32_61 = arith.constant 1 : i32
    %130 = tpu.dynamic_rotate %126 by %c1_i32_61 dim 1 : vector<8x256xf32>, i32 -> vector<8x256xf32>
    %c255_i32_62 = arith.constant 255 : i32
    %131 = tpu.dynamic_rotate %126 by %c255_i32_62 dim 1 : vector<8x256xf32>, i32 -> vector<8x256xf32>
    %c241_i32_63 = arith.constant 241 : i32
    %132 = tpu.dynamic_rotate %126 by %c241_i32_63 dim 1 : vector<8x256xf32>, i32 -> vector<8x256xf32>
    %c240_i32_64 = arith.constant 240 : i32
    %133 = tpu.dynamic_rotate %126 by %c240_i32_64 dim 1 : vector<8x256xf32>, i32 -> vector<8x256xf32>
    %c239_i32_65 = arith.constant 239 : i32
    %134 = tpu.dynamic_rotate %126 by %c239_i32_65 dim 1 : vector<8x256xf32>, i32 -> vector<8x256xf32>
    %135 = tpu.concatenate %127, %128, %129, %130, %126, %131, %132, %133, %134 in 0 : vector<8x256xf32>, vector<8x256xf32>, vector<8x256xf32>, vector<8x256xf32>, vector<8x256xf32>, vector<8x256xf32>, vector<8x256xf32>, vector<8x256xf32>, vector<8x256xf32> -> vector<72x256xf32>
    %136 = arith.mulf %135, %3 : vector<72x256xf32>
    %137 = arith.truncf %136 : vector<72x256xf32> to vector<72x256xbf16>
    %c0_66 = arith.constant 0 : index
    %c0_67 = arith.constant 0 : index
    %138 = vector.load %arg12[%c0_66, %c0_67] : memref<8x72xbf16, #tpu.memory_space<vmem>>, vector<8x72xbf16>
    %cst_68 = arith.constant dense<0.000000e+00> : vector<8x256xf32>
    %139 = tpu.matmul %138, %137, %cst_68 {dimension_numbers = #tpu.dot_dimension_numbers<[1], [0], [0], [1], [0, 0, 1, 1], [], []>} : vector<8x72xbf16>, vector<72x256xbf16>, vector<8x256xf32> -> vector<8x256xf32>
    %140 = vector.extract_strided_slice %83 {offsets = [80, 0], sizes = [8, 1], strides = [1, 1]} : vector<96x1xf32> to vector<8x1xf32>
    %141 = vector.broadcast %140 : vector<8x1xf32> to vector<8x256xf32>
    %142 = arith.addf %139, %141 : vector<8x256xf32>
    %c0_69 = arith.constant 0 : index
    %c0_70 = arith.constant 0 : index
    %143 = vector.load %arg13[%c0_69, %c0_70] : memref<8x8xbf16, #tpu.memory_space<vmem>>, vector<8x8xbf16>
    %144 = math.tanh %142 : vector<8x256xf32>
    %145 = arith.truncf %144 : vector<8x256xf32> to vector<8x256xbf16>
    %cst_71 = arith.constant dense<0.000000e+00> : vector<8x256xf32>
    %146 = tpu.matmul %143, %145, %cst_71 {dimension_numbers = #tpu.dot_dimension_numbers<[1], [0], [0], [1], [0, 0, 1, 1], [], []>} : vector<8x8xbf16>, vector<8x256xbf16>, vector<8x256xf32> -> vector<8x256xf32>
    %147 = vector.extract_strided_slice %83 {offsets = [88, 0], sizes = [8, 1], strides = [1, 1]} : vector<96x1xf32> to vector<8x1xf32>
    %148 = vector.broadcast %147 : vector<8x1xf32> to vector<8x256xf32>
    %149 = arith.addf %146, %148 : vector<8x256xf32>
    %150 = vector.extract_strided_slice %109 {offsets = [16, 0], sizes = [8, 256], strides = [1, 1]} : vector<40x256xf32> to vector<8x256xf32>
    %151 = arith.addf %150, %149 : vector<8x256xf32>
    %152 = math.tanh %151 : vector<8x256xf32>
    %cst_72 = arith.constant 1.000000e+00 : f32
    %153 = vector.broadcast %cst_72 : f32 to vector<8x256xf32>
    %154 = arith.subf %153, %125 : vector<8x256xf32>
    %155 = arith.mulf %154, %152 : vector<8x256xf32>
    %156 = arith.mulf %125, %84 : vector<8x256xf32>
    %157 = arith.addf %155, %156 : vector<8x256xf32>
    %c0_73 = arith.constant 0 : index
    %c0_74 = arith.constant 0 : index
    %158 = vector.load %arg23[%c0_73, %c0_74] : memref<8x256xf32, #tpu.memory_space<vmem>>, vector<8x256xf32>
    tpu.vector_store %arg23[%c0_73, %c0_74], %157 {strides = array<i32>} : memref<8x256xf32, #tpu.memory_space<vmem>>, vector<8x256xf32>,
    %c0_75 = arith.constant 0 : index
    %c0_76 = arith.constant 0 : index
    %159 = vector.load %arg20[%c0_75, %c0_76] : memref<18x1xf32, #tpu.memory_space<vmem>>, vector<18x1xf32>
    %c0_77 = arith.constant 0 : index
    %c0_78 = arith.constant 0 : index
    %160 = vector.load %arg17[%c0_77, %c0_78] : memref<8x8xbf16, #tpu.memory_space<vmem>>, vector<8x8xbf16>
    %161 = arith.truncf %157 : vector<8x256xf32> to vector<8x256xbf16>
    %cst_79 = arith.constant dense<0.000000e+00> : vector<8x256xf32>
    %162 = tpu.matmul %160, %161, %cst_79 {dimension_numbers = #tpu.dot_dimension_numbers<[1], [0], [0], [1], [0, 0, 1, 1], [], []>} : vector<8x8xbf16>, vector<8x256xbf16>, vector<8x256xf32> -> vector<8x256xf32>
    %163 = vector.extract_strided_slice %159 {offsets = [0, 0], sizes = [8, 1], strides = [1, 1]} : vector<18x1xf32> to vector<8x1xf32>
    %164 = vector.broadcast %163 : vector<8x1xf32> to vector<8x256xf32>
    %165 = arith.addf %162, %164 : vector<8x256xf32>
    %166 = math.tanh %165 : vector<8x256xf32>
    %c0_80 = arith.constant 0 : index
    %c0_81 = arith.constant 0 : index
    %167 = vector.load %arg18[%c0_80, %c0_81] : memref<8x8xbf16, #tpu.memory_space<vmem>>, vector<8x8xbf16>
    %168 = arith.truncf %166 : vector<8x256xf32> to vector<8x256xbf16>
    %cst_82 = arith.constant dense<0.000000e+00> : vector<8x256xf32>
    %169 = tpu.matmul %167, %168, %cst_82 {dimension_numbers = #tpu.dot_dimension_numbers<[1], [0], [0], [1], [0, 0, 1, 1], [], []>} : vector<8x8xbf16>, vector<8x256xbf16>, vector<8x256xf32> -> vector<8x256xf32>
    %170 = vector.extract_strided_slice %159 {offsets = [8, 0], sizes = [8, 1], strides = [1, 1]} : vector<18x1xf32> to vector<8x1xf32>
    %171 = vector.broadcast %170 : vector<8x1xf32> to vector<8x256xf32>
    %172 = arith.addf %169, %171 : vector<8x256xf32>
    %173 = math.tanh %172 : vector<8x256xf32>
    %c0_83 = arith.constant 0 : index
    %c0_84 = arith.constant 0 : index
    %174 = vector.load %arg16[%c0_83, %c0_84] : memref<72x256xf32, #tpu.memory_space<vmem>>, vector<72x256xf32>
    %c17_i32_85 = arith.constant 17 : i32
    %175 = tpu.dynamic_rotate %173 by %c17_i32_85 dim 1 : vector<8x256xf32>, i32 -> vector<8x256xf32>
    %c16_i32_86 = arith.constant 16 : i32
    %176 = tpu.dynamic_rotate %173 by %c16_i32_86 dim 1 : vector<8x256xf32>, i32 -> vector<8x256xf32>
    %c15_i32_87 = arith.constant 15 : i32
    %177 = tpu.dynamic_rotate %173 by %c15_i32_87 dim 1 : vector<8x256xf32>, i32 -> vector<8x256xf32>
    %c1_i32_88 = arith.constant 1 : i32
    %178 = tpu.dynamic_rotate %173 by %c1_i32_88 dim 1 : vector<8x256xf32>, i32 -> vector<8x256xf32>
    %c255_i32_89 = arith.constant 255 : i32
    %179 = tpu.dynamic_rotate %173 by %c255_i32_89 dim 1 : vector<8x256xf32>, i32 -> vector<8x256xf32>
    %c241_i32_90 = arith.constant 241 : i32
    %180 = tpu.dynamic_rotate %173 by %c241_i32_90 dim 1 : vector<8x256xf32>, i32 -> vector<8x256xf32>
    %c240_i32_91 = arith.constant 240 : i32
    %181 = tpu.dynamic_rotate %173 by %c240_i32_91 dim 1 : vector<8x256xf32>, i32 -> vector<8x256xf32>
    %c239_i32_92 = arith.constant 239 : i32
    %182 = tpu.dynamic_rotate %173 by %c239_i32_92 dim 1 : vector<8x256xf32>, i32 -> vector<8x256xf32>
    %183 = tpu.concatenate %175, %176, %177, %178, %173, %179, %180, %181, %182 in 0 : vector<8x256xf32>, vector<8x256xf32>, vector<8x256xf32>, vector<8x256xf32>, vector<8x256xf32>, vector<8x256xf32>, vector<8x256xf32>, vector<8x256xf32>, vector<8x256xf32> -> vector<72x256xf32>
    %184 = arith.mulf %183, %174 : vector<72x256xf32>
    %185 = arith.truncf %184 : vector<72x256xf32> to vector<72x256xbf16>
    %c0_93 = arith.constant 0 : index
    %c0_94 = arith.constant 0 : index
    %186 = vector.load %arg19[%c0_93, %c0_94] : memref<2x72xbf16, #tpu.memory_space<vmem>>, vector<2x72xbf16>
    %cst_95 = arith.constant dense<0.000000e+00> : vector<2x256xf32>
    %187 = tpu.matmul %186, %185, %cst_95 {dimension_numbers = #tpu.dot_dimension_numbers<[1], [0], [0], [1], [0, 0, 1, 1], [], []>} : vector<2x72xbf16>, vector<72x256xbf16>, vector<2x256xf32> -> vector<2x256xf32>
    %188 = vector.extract_strided_slice %159 {offsets = [16, 0], sizes = [2, 1], strides = [1, 1]} : vector<18x1xf32> to vector<2x1xf32>
    %189 = vector.broadcast %188 : vector<2x1xf32> to vector<2x256xf32>
    %190 = arith.addf %187, %189 : vector<2x256xf32>
    %191 = arith.negf %190 : vector<2x256xf32>
    %192 = math.exp %191 : vector<2x256xf32>
    %cst_96 = arith.constant 1.000000e+00 : f32
    %193 = vector.broadcast %cst_96 : f32 to vector<2x256xf32>
    %194 = arith.addf %193, %192 : vector<2x256xf32>
    %195 = arith.divf %193, %194 : vector<2x256xf32>
    %c0_97 = arith.constant 0 : index
    %c0_98 = arith.constant 0 : index
    %c0_99 = arith.constant 0 : index
    %c0_100 = arith.constant 0 : index
    %196 = vector.load %arg21[%c0_97, %c0_98, %c0_99, %c0_100] : memref<1x1x2x256xf32, #tpu.memory_space<vmem>>, vector<1x1x2x256xf32>
    %197 = vector.shape_cast %196 : vector<1x1x2x256xf32> to vector<2x256xf32>
    %198 = vector.shape_cast %195 : vector<2x256xf32> to vector<1x1x2x256xf32>
    tpu.vector_store %arg21[%c0_97, %c0_98, %c0_99, %c0_100], %198 {strides = array<i32>} : memref<1x1x2x256xf32, #tpu.memory_space<vmem>>, vector<1x1x2x256xf32>,
    return
  }
  func.func @transform_0(%arg0: i32, %arg1: i32) -> (i32, i32, i32, i32) {
    %c0_i32 = arith.constant 0 : i32
    %c0_i32_0 = arith.constant 0 : i32
    %c0_i32_1 = arith.constant 0 : i32
    return %arg0, %arg1, %c0_i32, %c0_i32_0 : i32, i32, i32, i32
  }
  func.func @transform_1(%arg0: i32, %arg1: i32) -> (i32, i32) {
    %c0_i32 = arith.constant 0 : i32
    %c0_i32_0 = arith.constant 0 : i32
    %c0_i32_1 = arith.constant 0 : i32
    return %c0_i32, %c0_i32_0 : i32, i32
  }
  func.func @transform_2(%arg0: i32, %arg1: i32) -> (i32, i32) {
    %c0_i32 = arith.constant 0 : i32
    %c0_i32_0 = arith.constant 0 : i32
    %c0_i32_1 = arith.constant 0 : i32
    return %c0_i32, %c0_i32_0 : i32, i32
  }
  func.func @transform_3(%arg0: i32, %arg1: i32) -> (i32, i32) {
    %c0_i32 = arith.constant 0 : i32
    %c0_i32_0 = arith.constant 0 : i32
    %c0_i32_1 = arith.constant 0 : i32
    return %c0_i32, %c0_i32_0 : i32, i32
  }
  func.func @transform_4(%arg0: i32, %arg1: i32) -> (i32, i32) {
    %c0_i32 = arith.constant 0 : i32
    %c0_i32_0 = arith.constant 0 : i32
    %c0_i32_1 = arith.constant 0 : i32
    return %c0_i32, %c0_i32_0 : i32, i32
  }
  func.func @transform_5(%arg0: i32, %arg1: i32) -> (i32, i32) {
    %c0_i32 = arith.constant 0 : i32
    %c0_i32_0 = arith.constant 0 : i32
    %c0_i32_1 = arith.constant 0 : i32
    return %c0_i32, %c0_i32_0 : i32, i32
  }
  func.func @transform_6(%arg0: i32, %arg1: i32) -> (i32, i32) {
    %c0_i32 = arith.constant 0 : i32
    %c0_i32_0 = arith.constant 0 : i32
    %c0_i32_1 = arith.constant 0 : i32
    return %c0_i32, %c0_i32_0 : i32, i32
  }
  func.func @transform_7(%arg0: i32, %arg1: i32) -> (i32, i32) {
    %c0_i32 = arith.constant 0 : i32
    %c0_i32_0 = arith.constant 0 : i32
    %c0_i32_1 = arith.constant 0 : i32
    return %c0_i32, %c0_i32_0 : i32, i32
  }
  func.func @transform_8(%arg0: i32, %arg1: i32) -> (i32, i32) {
    %c0_i32 = arith.constant 0 : i32
    %c0_i32_0 = arith.constant 0 : i32
    %c0_i32_1 = arith.constant 0 : i32
    return %c0_i32, %c0_i32_0 : i32, i32
  }
  func.func @transform_9(%arg0: i32, %arg1: i32) -> (i32, i32) {
    %c0_i32 = arith.constant 0 : i32
    %c0_i32_0 = arith.constant 0 : i32
    %c0_i32_1 = arith.constant 0 : i32
    return %c0_i32, %c0_i32_0 : i32, i32
  }
  func.func @transform_10(%arg0: i32, %arg1: i32) -> (i32, i32) {
    %c0_i32 = arith.constant 0 : i32
    %c0_i32_0 = arith.constant 0 : i32
    %c0_i32_1 = arith.constant 0 : i32
    return %c0_i32, %c0_i32_0 : i32, i32
  }
  func.func @transform_11(%arg0: i32, %arg1: i32) -> (i32, i32) {
    %c0_i32 = arith.constant 0 : i32
    %c0_i32_0 = arith.constant 0 : i32
    %c0_i32_1 = arith.constant 0 : i32
    return %c0_i32, %c0_i32_0 : i32, i32
  }
  func.func @transform_12(%arg0: i32, %arg1: i32) -> (i32, i32) {
    %c0_i32 = arith.constant 0 : i32
    %c0_i32_0 = arith.constant 0 : i32
    %c0_i32_1 = arith.constant 0 : i32
    return %c0_i32, %c0_i32_0 : i32, i32
  }
  func.func @transform_13(%arg0: i32, %arg1: i32) -> (i32, i32) {
    %c0_i32 = arith.constant 0 : i32
    %c0_i32_0 = arith.constant 0 : i32
    %c0_i32_1 = arith.constant 0 : i32
    return %c0_i32, %c0_i32_0 : i32, i32
  }
  func.func @transform_14(%arg0: i32, %arg1: i32) -> (i32, i32) {
    %c0_i32 = arith.constant 0 : i32
    %c0_i32_0 = arith.constant 0 : i32
    %c0_i32_1 = arith.constant 0 : i32
    return %c0_i32, %c0_i32_0 : i32, i32
  }
  func.func @transform_15(%arg0: i32, %arg1: i32) -> (i32, i32) {
    %c0_i32 = arith.constant 0 : i32
    %c0_i32_0 = arith.constant 0 : i32
    %c0_i32_1 = arith.constant 0 : i32
    return %c0_i32, %c0_i32_0 : i32, i32
  }
  func.func @transform_16(%arg0: i32, %arg1: i32) -> (i32, i32) {
    %c0_i32 = arith.constant 0 : i32
    %c0_i32_0 = arith.constant 0 : i32
    %c0_i32_1 = arith.constant 0 : i32
    return %c0_i32, %c0_i32_0 : i32, i32
  }
  func.func @transform_17(%arg0: i32, %arg1: i32) -> (i32, i32) {
    %c0_i32 = arith.constant 0 : i32
    %c0_i32_0 = arith.constant 0 : i32
    %c0_i32_1 = arith.constant 0 : i32
    return %c0_i32, %c0_i32_0 : i32, i32
  }
  func.func @transform_18(%arg0: i32, %arg1: i32) -> (i32, i32) {
    %c0_i32 = arith.constant 0 : i32
    %c0_i32_0 = arith.constant 0 : i32
    %c0_i32_1 = arith.constant 0 : i32
    return %c0_i32, %c0_i32_0 : i32, i32
  }
  func.func @transform_19(%arg0: i32, %arg1: i32) -> (i32, i32, i32, i32) {
    %c0_i32 = arith.constant 0 : i32
    %c0_i32_0 = arith.constant 0 : i32
    %c0_i32_1 = arith.constant 0 : i32
    return %arg0, %arg1, %c0_i32, %c0_i32_0 : i32, i32, i32, i32
  }
}

</mosaic_0001>

<bundles_post_ra>
// kernel: convgru_forward.1
= control target key start
LH: loop header
LB: loop body
LE: loop exit
PB: predicated region body
PF: predicated region fallthrough
CT: control target
= control target key end

     0   :  { %s2910_s30 = smov 0   ;;  %s2912_s20 = smov 0   ;;  %s4120_s0 = inlined_call_operand.vmem [shape: bf16[2,3,8,256], index: 0, kind: input, shape index: {}]   ;;  %s4121_s1 = inlined_call_operand.vmem [shape: f32[144,256], index: 1, kind: input, shape index: {}, may-alias: {1,7}]   ;;  %s4122_s2 = inlined_call_operand.vmem [shape: bf16[40,144], index: 2, kind: input, shape index: {}]   ;;  %s4123_s3 = inlined_call_operand.vmem [shape: bf16[40,40], index: 3, kind: input, shape index: {}]   ;;  %s4124_s4 = inlined_call_operand.vmem [shape: bf16[8,72], index: 4, kind: input, shape index: {}]   ;;  %s4125_s5 = inlined_call_operand.vmem [shape: bf16[8,8], index: 5, kind: input, shape index: {}]   ;;  %s4126_s6 = inlined_call_operand.vmem [shape: f32[96,1], index: 6, kind: input, shape index: {}]   ;;  %s4127_s7 = inlined_call_operand.vmem [shape: f32[144,256], index: 7, kind: input, shape index: {}, may-alias: {1,7}]   ;;  %s4128_s8 = inlined_call_operand.vmem [shape: bf16[40,144], index: 8, kind: input, shape index: {}]   ;;  %s4129_s9 = inlined_call_operand.vmem [shape: bf16[40,40], index: 9, kind: input, shape index: {}]   ;;  %s4130_s10 = inlined_call_operand.vmem [shape: bf16[8,72], index: 10, kind: input, shape index: {}]   ;;  %s4131_s11 = inlined_call_operand.vmem [shape: bf16[8,8], index: 11, kind: input, shape index: {}]   ;;  %s4132_s12 = inlined_call_operand.vmem [shape: f32[96,1], index: 12, kind: input, shape index: {}]   ;;  %s4133_s13 = inlined_call_operand.vmem [shape: f32[72,256], index: 13, kind: input, shape index: {}, may-alias: {13,14}]   ;;  %s4134_s14 = inlined_call_operand.vmem [shape: f32[72,256], index: 14, kind: input, shape index: {}, may-alias: {13,14}]   ;;  %s4135_s15 = inlined_call_operand.vmem [shape: bf16[8,8], index: 15, kind: input, shape index: {}]   ;;  %s4136_s16 = inlined_call_operand.vmem [shape: bf16[8,8], index: 16, kind: input, shape index: {}]   ;;  %s4137_s17 = inlined_call_operand.vmem [shape: bf16[2,72], index: 17, kind: input, shape index: {}]   ;;  %s4138_s18 = inlined_call_operand.vmem [shape: f32[18,1], index: 18, kind: input, shape index: {}]   ;;  %s4139_s19 = inlined_call_operand.vmem [shape: f32[2,3,2,256], index: 19, kind: output, shape index: {}]  }
   0x1   :  { %4165 = sst [smem:[#allocation8_spill]] %s4120_s0  ;;  %s2908_s0 = smov 0  }
   0x2   :  { %4166 = sst [smem:[#allocation9_spill]] %s4121_s1  ;;  %s2914_s21 = smov 0  }
   0x3   :  { %4167 = sst [smem:[#allocation10_spill]] %s4122_s2  ;;  %s2916_s1 = smov 0  }
   0x4   :  { %4168 = sst [smem:[#allocation11_spill]] %s4123_s3 }
   0x5   :  { %4169 = sst [smem:[#allocation12_spill]] %s4126_s6 }
   0x6   :  { %4170 = sst [smem:[#allocation13_spill]] %s4137_s17 }
   0x7   :  { %4171 = sst [smem:[#allocation14_spill]] %s4139_s19 }
   0x8 LB: > { %4172 = sst [smem:[#allocation4_spill]] %s2788_s20  ;;  %s38_s22 = sadd.s32 1, %s2788_s20  ;;  %s2796_s1 = sphi %s2916_s1, %s29_s1   ;;  %s2792_s21 = sphi %s2914_s21, %s4195_s21   ;;  %s2788_s20 = sphi %s2912_s20, %s4194_s20   ;;  %s2784_s30 = sphi %s2910_s30, %s4193_s30   ;;  %s2780_s0 = sphi %s2908_s0, %s4192_s0  }
   0x9   : > { %4173 = sst [smem:[#allocation5_spill]] %s2792_s21  ;;  %s41_s2 = sadd.s32 1, %s2792_s21 }
   0xa   : > { %4174 = sst [smem:[#allocation6_spill]] %s2796_s1  ;;  %p39_p0 = scmp.ge.s32.totalorder %s38_s22, 3 }
   0xb   : > { %p2470_p1 = scmp.ge.s32.totalorder %s2796_s1, 1  ;;  %p557_p2 = scmp.lt.s32.totalorder %s2796_s1, 7 }
   0xc   : > { %s4197_s22 = smov (%p39_p0, %s38_s22), 0  ;;  %s4199_s2 = smov (!%p39_p0, %s41_s2), %s2792_s21 }
   0xd   : > { %4175 = sst [smem:[#allocation7_spill]] %s4197_s22  ;;  %p558_p3 = pnand %p2470_p1, %p557_p2 }
   0xe   : > { %p43_p4 = scmp.ge.s32.totalorder %s4199_s2, 2  ;;  %p621_p5 = scmp.lt.s32.totalorder (!%p558_p3), %s2784_s30, 1 }
   0xf   : > { %561 = sbr.rel (%p558_p3) target bundleno = 3483 (0xd9b), region = 96  ;;  %p623_p6 = scmp.lt.s32.totalorder (!%p558_p3), %s2780_s0, 2 }
  0x10   : > { %s4201_s2 = smov (%p43_p4, %s4199_s2), 0  ;;  %s4176_s20 = sld [smem:[#allocation8_spill]] (!%p558_p3) }
  0x11   : > { %s4177_s19 = sld [smem:[#allocation14_spill]] (!%p558_p3)  ;;  %p2475_p7 = scmp.ne.s32.totalorder (!%p558_p3), %s2780_s0, 0 }
  0x16   : > { %s4203_s30 = smov (!%p621_p5, %s2784_s30), 1  ;;  %643 = sbr.rel (%p2475_p7) target bundleno = 29 (0x1d), region = 100 }
  0x17   : > { %s624_s23 = scalar_select %p623_p6, %s2780_s0, 2 }
  0x18   : > { %s2535_s24 = smul.u32 6, %s4203_s30  ;;  %v2798_v0 = vmov (!%p2475_p7), 0.0  }
  0x19   : > { %s2471_s25 = sshll.u32 %s624_s23, 1  ;;  %644 = vst [vmem:[#allocation2] sm:$0xff] (!%p2475_p7), %v2798_v0  ;;  %645 = vst [vmem:[#allocation2 + $0x8] sm:$0xff] (!%p2475_p7), %v2798_v0 }
  0x1a   : > { %s627_s3 = sadd.s32 %s2535_s24, %s2471_s25  ;;  %646 = vst [vmem:[#allocation3] sm:$0xff] (!%p2475_p7), %v2798_v0  ;;  %647 = vst [vmem:[#allocation3 + $0x8] sm:$0xff] (!%p2475_p7), %v2798_v0 }
  0x1b   : > { %s2472_s26 = sshll.u32 %s627_s3, 2  ;;  %s2474_s27 = sshll.u32 %s627_s3, 1 }
  0x1c   : > { %s629_s1 = scalar_lea.vmem %s4176_s20, %s2472_s26  ;;  %s2944_s17 = scalar_lea.vmem %s4177_s19, %s2474_s27 }
  0x1d PF: > { %v2948_v2 = vld [vmem:[%s629_s1] sm:$0xff]  ;;  %s4160_s30 = smov 17   ;;  %s4158_s0 = smov 16   ;;  %vm933_vm0 = vcmask 130048   ;;  %v2807_v10 = vmov 0   ;;  %v727_v16 = vlaneseq  ;;  %vm1073_vm9 = vcmask 1043456  }
  0x1e   : > { %v667_v3 = vunpack.c.l.bf16 %v2948_v2  ;;  %v668_v4 = vunpack.c.h.bf16 %v2948_v2  ;;  %s4156_s20 = smov 15   ;;  %s4154_s21 = smov 1   ;;  %2627 = vset.pattern.permute.xlu1 %v2807_v10  ;;  %2626 = vset.pattern.permute.xlu0 %v2807_v10  ;;  %vm1063_vm10 = vcmask 326656   ;;  %vm1253_vm11 = vcmask 588800  }
  0x1f   : > { %s4152_s1 = smov 127   ;;  %s4146_s22 = smov 113   ;;  %1112 = vmatprep.mubr.bf16.mxu1 %v2807_v10  ;;  %v3026_v18 = vand.u32 127, %v727_v16  ;;  %vm1314_vm12 = vcmask 64512  }
  0x20   : > { %v2946_v1 = vld [vmem:[#allocation2 + $0x8] sm:$0xff]  ;;  %v2586_v5 = vpack.i.bf16 %v668_v4, %v667_v3  ;;  %v2960_v6 = vld [vmem:[#allocation2] sm:$0xff]  ;;  %s4150_s23 = smov 112   ;;  %s4148_s24 = smov 111  }
  0x21   : > { %725 = vrot.lane.b32.xlu1 %v2946_v1, %s4160_s30  ;;  %s4178_s26 = sld [smem:[#allocation10_spill]]  ;;  %s4179_s6 = sld [smem:[#allocation12_spill]]  ;;  %vm729_vm1 = vcmp.lt.s32.totalorder %v3026_v18, 17  ;;  %vm742_vm2 = vcmp.lt.s32.totalorder %v3026_v18, 16  ;;  %vm755_vm3 = vcmp.lt.s32.totalorder %v3026_v18, 15  ;;  %vm768_vm4 = vcmp.lt.s32.totalorder %v3026_v18, 1 }
  0x22   : > { %2587 = vrot.lane.b32.xlu0 %v2586_v5, %s4160_s30  ;;  %vm781_vm5 = vcmp.lt.s32.totalorder %v3026_v18, 127  ;;  %vm794_vm6 = vcmp.lt.s32.totalorder %v3026_v18, 113  ;;  %vm807_vm7 = vcmp.lt.s32.totalorder %v3026_v18, 112  ;;  %vm820_vm8 = vcmp.lt.s32.totalorder %v3026_v18, 111  ;;  %s4181_s25 = sld [smem:[#allocation11_spill]]  ;;  %s4182_s27 = smov 15  }
  0x23   : > { %s4183_s28 = smov 1   ;;  %s4184_s29 = smov 127  }
  0x24   : > { %s4187_s3 = smov 111   ;;  %s4188_s19 = smov 17  }
  0x25   : > { %2592 = vrot.lane.b32.xlu1 %v2586_v5, %s4158_s0 }
  0x26   : > { %721 = vrot.lane.b32.xlu0 %v2960_v6, %s4160_s30 }
  0x27   : > { %v2630_v7 = vld [vmem:[%s4178_s26 + $0x4] ss:$8 sps:$4 sm:$0xff]   ;;  %v671_v11 = vld [vmem:[%s4179_s6 + $0x10] sm:$0xff]  ;;  %v672_v12 = vld [vmem:[%s4179_s6 + $0x18] sm:$0xff] }
  0x28   : > { %2482 = vmatprep.mubr.msk.bf16.mxu0 %vm933_vm0, %v2630_v7  ;;  %v670_v8 = vld [vmem:[%s4179_s6 + $0x8] sm:$0xff]  ;;  %v669_v9 = vld [vmem:[%s4179_s6] sm:$0xff] }
  0x29   : > { %740 = vrot.lane.b32.xlu1 %v2946_v1, %s4158_s0  ;;  %v673_v13 = vld [vmem:[%s4179_s6 + $0x20] sm:$0xff]  ;;  %v674_v14 = vld [vmem:[%s4179_s6 + $0x28] sm:$0xff] }
  0x2a   : > { %736 = vrot.lane.b32.xlu0 %v2960_v6, %s4158_s0  ;;  %v677_v15 = vld [vmem:[%s4179_s6 + $0x40] sm:$0xff] }
  0x2d   : > { %749 = vrot.lane.b32.xlu1 %v2960_v6, %s4156_s20 }
  0x2e   : > { %2597 = vrot.lane.b32.xlu0 %v2586_v5, %s4156_s20 }
  0x31   : > { %2602 = vrot.lane.b32.xlu1 %v2586_v5, %s4154_s21 }
  0x32   : > { %753 = vrot.lane.b32.xlu0 %v2946_v1, %s4156_s20  ;;  %s4185_s20 = smov 113  }
  0x35   : > { %766 = vrot.lane.b32.xlu1 %v2946_v1, %s4154_s21 }
  0x36   : > { %762 = vrot.lane.b32.xlu0 %v2960_v6, %s4154_s21  ;;  %s4186_s21 = smov 112  }
  0x39   : > { %775 = vrot.lane.b32.xlu1 %v2960_v6, %s4152_s1 }
  0x3a   : > { %2607 = vrot.lane.b32.xlu0 %v2586_v5, %s4152_s1 }
  0x3d   : > { %2612 = vrot.lane.b32.xlu1 %v2586_v5, %s4146_s22 }
  0x3e   : > { %779 = vrot.lane.b32.xlu0 %v2946_v1, %s4152_s1 }
  0x41   : > { %792 = vrot.lane.b32.xlu1 %v2946_v1, %s4146_s22 }
  0x42   : > { %788 = vrot.lane.b32.xlu0 %v2960_v6, %s4146_s22  ;;  %s4180_s22 = sld [smem:[#allocation9_spill]] }
  0x45   : > { %801 = vrot.lane.b32.xlu1 %v2960_v6, %s4150_s23 }
  0x46   : > { %2617 = vrot.lane.b32.xlu0 %v2586_v5, %s4150_s23 }
  0x48   : > { %v684_v23 = vld [vmem:[%s4180_s22 + $0x8] sm:$0xff]  ;;  %v686_v26 = vld [vmem:[%s4180_s22 + $0x18] sm:$0xff]  ;;  %v683_v28 = vld [vmem:[%s4180_s22] sm:$0xff] }
  0x49   : > { %2622 = vrot.lane.b32.xlu1 %v2586_v5, %s4148_s24  ;;  %v685_v29 = vld [vmem:[%s4180_s22 + $0x10] sm:$0xff]  ;;  %v690_v40 = vld [vmem:[%s4180_s22 + $0x38] sm:$0xff]  ;;  %v688_v41 = vld [vmem:[%s4180_s22 + $0x28] sm:$0xff] }
  0x4a   : > { %805 = vrot.lane.b32.xlu0 %v2946_v1, %s4150_s23  ;;  %v689_v35 = vld [vmem:[%s4180_s22 + $0x30] sm:$0xff]  ;;  %v687_v43 = vld [vmem:[%s4180_s22 + $0x20] sm:$0xff]  ;;  %v694_v0 = vld [vmem:[%s4180_s22 + $0x58] sm:$0xff] }
  0x4b   : > { %v693_v61 = vld [vmem:[%s4180_s22 + $0x50] sm:$0xff]  ;;  %v692_v5 = vld [vmem:[%s4180_s22 + $0x48] sm:$0xff]  ;;  %v702_v16 = vld [vmem:[%s4180_s22 + $0x98] sm:$0xff] }
  0x4c   : > { %v705_v2 = vld [vmem:[%s4180_s22 + $0xb0] sm:$0xff] }
  0x4d   : > { %818 = vrot.lane.b32.xlu1 %v2946_v1, %s4148_s24 }
  0x4e   : > { %814 = vrot.lane.b32.xlu0 %v2960_v6, %s4148_s24 }
  0x51   : > { %891 = vperm.xlu1 %2627, %v670_v8   ;;  %v691_v8 = vld [vmem:[%s4180_s22 + $0x40] sm:$0xff] }
  0x52   : > { %886 = vperm.xlu0 %2626, %v669_v9  }
  0x55   : > { %896 = vperm.xlu1 %2627, %v671_v11  }
  0x56   : > { %901 = vperm.xlu0 %2626, %v672_v12  }
  0x59   : > { %906 = vperm.xlu1 %2627, %v673_v13  }
  0x5a   : > { %1027 = vperm.xlu0 %2626, %v674_v14  }
  0x5d   : > { %1042 = vperm.xlu1 %2627, %v677_v15   ;;  %v700_v15 = vld [vmem:[%s4180_s22 + $0x88] sm:$0xff] }
  0x93   : > { %v726_v17 = vpop.permute.xlu1 %725 }
  0x94   : > { %v2588_v19 = vpop.permute.xlu0 %2587 }
  0x95   : > { %v2590_v21 = vunpack.i.h.bf16 %v2588_v19  ;;  %v2589_v22 = vunpack.i.l.bf16 %v2588_v19 }
  0x97   : > { %v2593_v20 = vpop.permute.xlu1 %2592  ;;  %v730_v27 = vsel %vm729_vm1, %v2589_v22, %v2590_v21  ;;  %v732_v30 = vsel %vm729_vm1, %v2590_v21, %v2589_v22 }
  0x98   : > { %v2595_v24 = vunpack.i.h.bf16 %v2593_v20  ;;  %v2594_v25 = vunpack.i.l.bf16 %v2593_v20  ;;  %v722_v31 = vpop.permute.xlu0 %721  ;;  %v826_v36 = vmul.f32 %v730_v27, %v684_v23  ;;  %v825_v38 = vmul.f32 %v732_v30, %v683_v28  ;;  %v697_v20 = vld [vmem:[%s4180_s22 + $0x70] sm:$0xff]  ;;  %v699_v23 = vld [vmem:[%s4180_s22 + $0x80] sm:$0xff] }
  0x99   : > { %v733_v33 = vsel %vm729_vm1, %v726_v17, %v722_v31  ;;  %v731_v34 = vsel %vm729_vm1, %v722_v31, %v726_v17  ;;  %v695_v28 = vld [vmem:[%s4180_s22 + $0x60] sm:$0xff] }
  0x9a   : > { %v828_v37 = vmul.f32 %v731_v34, %v686_v26  ;;  %v827_v39 = vmul.f32 %v733_v33, %v685_v29  ;;  %v743_v42 = vsel %vm742_vm2, %v2594_v25, %v2595_v24  ;;  %v745_v44 = vsel %vm742_vm2, %v2595_v24, %v2594_v25  ;;  %v701_v24 = vld [vmem:[%s4180_s22 + $0x90] sm:$0xff]  ;;  %v698_v25 = vld [vmem:[%s4180_s22 + $0x78] sm:$0xff]  ;;  %v696_v26 = vld [vmem:[%s4180_s22 + $0x68] sm:$0xff] }
  0x9b   : > { %v741_v32 = vpop.permute.xlu1 %740  ;;  %v830_v53 = vmul.f32 %v743_v42, %v688_v41  ;;  %v829_v54 = vmul.f32 %v745_v44, %v687_v43  ;;  %v842_v34 = vmul.f32 %v700_v15, %v668_v4 }
  0x9c   : > { %v737_v45 = vpop.permute.xlu0 %736  ;;  %v862_v46 = vpack.c.bf16 %v828_v37, %v826_v36  ;;  %v861_v47 = vpack.c.bf16 %v827_v39, %v825_v38  ;;  %v841_v38 = vmul.f32 %v699_v23, %v667_v3  ;;  %v843_v39 = vmul.f32 %v701_v24, %v2960_v6 }
  0x9d   : > { %v744_v49 = vsel %vm742_vm2, %v737_v45, %v741_v32  ;;  %v746_v50 = vsel %vm742_vm2, %v741_v32, %v737_v45 }
  0x9e   : > { %v831_v51 = vmul.f32 %v746_v50, %v689_v35  ;;  %v832_v52 = vmul.f32 %v744_v49, %v690_v40  ;;  %943 = vmatprep.subr.bf16.mxu0 %v862_v46  ;;  %v844_v35 = vmul.f32 %v702_v16, %v2946_v1  ;;  %v869_v3 = vpack.c.bf16 %v843_v39, %v841_v38 }
  0x9f   : > { %v750_v48 = vpop.permute.xlu1 %749  ;;  %944 = vmatpush1.bf16.msra.mxu0 %v861_v47 }
  0xa0   : > { %v2598_v55 = vpop.permute.xlu0 %2597  ;;  %v864_v56 = vpack.c.bf16 %v832_v52, %v830_v53  ;;  %v863_v57 = vpack.c.bf16 %v831_v51, %v829_v54  ;;  %v870_v47 = vpack.c.bf16 %v844_v35, %v842_v34  ;;  %v706_v52 = vld [vmem:[%s4180_s22 + $0xb8] sm:$0xff]  ;;  %v704_v53 = vld [vmem:[%s4180_s22 + $0xa8] sm:$0xff] }
  0xa1   : > { %v2600_v59 = vunpack.i.h.bf16 %v2598_v55  ;;  %v2599_v60 = vunpack.i.l.bf16 %v2598_v55  ;;  %v703_v55 = vld [vmem:[%s4180_s22 + $0xa0] sm:$0xff]  ;;  %v712_v34 = vld [vmem:[%s4180_s22 + $0xe8] sm:$0xff] }
  0xa2   : > { %945 = vmatprep.subr.bf16.mxu0 %v864_v56 }
  0xa3   : > { %v2603_v58 = vpop.permute.xlu1 %2602  ;;  %946 = vmatpush1.bf16.msra.mxu0 %v863_v57  ;;  %v756_v7 = vsel %vm755_vm3, %v2599_v60, %v2600_v59  ;;  %v758_v9 = vsel %vm755_vm3, %v2600_v59, %v2599_v60 }
  0xa4   : > { %v2605_v62 = vunpack.i.h.bf16 %v2603_v58  ;;  %v2604_v63 = vunpack.i.l.bf16 %v2603_v58  ;;  %v754_v11 = vpop.permute.xlu0 %753  ;;  %v834_v21 = vmul.f32 %v756_v7, %v692_v5  ;;  %v833_v22 = vmul.f32 %v758_v9, %v691_v8  ;;  %v710_v7 = vld [vmem:[%s4180_s22 + $0xd8] sm:$0xff]  ;;  %v708_v8 = vld [vmem:[%s4180_s22 + $0xc8] sm:$0xff] }
  0xa5   : > { %v757_v13 = vsel %vm755_vm3, %v750_v48, %v754_v11  ;;  %v759_v14 = vsel %vm755_vm3, %v754_v11, %v750_v48  ;;  %v707_v11 = vld [vmem:[%s4180_s22 + $0xc0] sm:$0xff] }
  0xa6   : > { %v835_v17 = vmul.f32 %v759_v14, %v693_v61  ;;  %v836_v19 = vmul.f32 %v757_v13, %v694_v0  ;;  %v769_v27 = vsel %vm768_vm4, %v2604_v63, %v2605_v62  ;;  %v771_v29 = vsel %vm768_vm4, %v2605_v62, %v2604_v63  ;;  %v709_v63 = vld [vmem:[%s4180_s22 + $0xd0] sm:$0xff] }
  0xa7   : > { %v767_v12 = vpop.permute.xlu1 %766  ;;  %v838_v42 = vmul.f32 %v769_v27, %v696_v26  ;;  %v837_v43 = vmul.f32 %v771_v29, %v695_v28 }
  0xa8   : > { %v763_v30 = vpop.permute.xlu0 %762  ;;  %v866_v31 = vpack.c.bf16 %v836_v19, %v834_v21  ;;  %v865_v32 = vpack.c.bf16 %v835_v17, %v833_v22 }
  0xa9   : > { %v770_v36 = vsel %vm768_vm4, %v763_v30, %v767_v12  ;;  %v772_v37 = vsel %vm768_vm4, %v767_v12, %v763_v30  ;;  %v713_v30 = vld [vmem:[%s4180_s22 + $0xf0] sm:$0xff] }
  0xaa   : > { %v839_v40 = vmul.f32 %v772_v37, %v697_v20  ;;  %v840_v41 = vmul.f32 %v770_v36, %v698_v25  ;;  %947 = vmatprep.subr.bf16.mxu0 %v866_v31  ;;  %v711_v36 = vld [vmem:[%s4180_s22 + $0xe0] sm:$0xff] }
  0xab   : > { %v776_v33 = vpop.permute.xlu1 %775  ;;  %948 = vmatpush1.bf16.msra.mxu0 %v865_v32 }
  0xac   : > { %v2608_v4 = vpop.permute.xlu0 %2607  ;;  %v868_v44 = vpack.c.bf16 %v840_v41, %v838_v42  ;;  %v867_v45 = vpack.c.bf16 %v839_v40, %v837_v43 }
  0xad   : > { %v2610_v48 = vunpack.i.h.bf16 %v2608_v4  ;;  %v2609_v49 = vunpack.i.l.bf16 %v2608_v4  ;;  %v717_v4 = vld [vmem:[%s4180_s22 + $0x110] sm:$0xff] }
  0xae   : > { %949 = vmatprep.subr.bf16.mxu0 %v868_v44 }
  0xaf   : > { %v2613_v46 = vpop.permute.xlu1 %2612  ;;  %950 = vmatpush1.bf16.msra.mxu0 %v867_v45  ;;  %v784_v54 = vsel %vm781_vm5, %v2610_v48, %v2609_v49  ;;  %v782_v56 = vsel %vm781_vm5, %v2609_v49, %v2610_v48  ;;  %v715_v49 = vld [vmem:[%s4180_s22 + $0x100] sm:$0xff] }
  0xb0   : > { %v2615_v50 = vunpack.i.h.bf16 %v2613_v46  ;;  %v2614_v51 = vunpack.i.l.bf16 %v2613_v46  ;;  %v780_v57 = vpop.permute.xlu0 %779  ;;  %951 = vmatprep.subr.bf16.mxu0 %v870_v47  ;;  %v846_v0 = vmul.f32 %v784_v54, %v704_v53  ;;  %v845_v5 = vmul.f32 %v782_v56, %v703_v55  ;;  %v718_v46 = vld [vmem:[%s4180_s22 + $0x118] sm:$0xff]  ;;  %v716_v47 = vld [vmem:[%s4180_s22 + $0x108] sm:$0xff] }
  0xb1   : > { %v783_v59 = vsel %vm781_vm5, %v776_v33, %v780_v57  ;;  %v785_v60 = vsel %vm781_vm5, %v780_v57, %v776_v33  ;;  %v714_v33 = vld [vmem:[%s4180_s22 + $0xf8] sm:$0xff] }
  0xb2   : > { %v847_v61 = vmul.f32 %v783_v59, %v705_v2  ;;  %v848_v62 = vmul.f32 %v785_v60, %v706_v52  ;;  %v797_v9 = vsel %vm794_vm6, %v2615_v50, %v2614_v51  ;;  %v795_v12 = vsel %vm794_vm6, %v2614_v51, %v2615_v50  ;;  %v2628_v60 = vld [vmem:[%s4178_s26] ss:$8 sps:$4 sm:$0xff]  }
  0xb3   : > { %v793_v58 = vpop.permute.xlu1 %792  ;;  %952 = vmatpush1.bf16.msra.mxu0 %v869_v3  ;;  %v850_v22 = vmul.f32 %v797_v9, %v708_v8  ;;  %v849_v23 = vmul.f32 %v795_v12, %v707_v11 }
  0xb4   : > { %v789_v13 = vpop.permute.xlu0 %788  ;;  %v872_v14 = vpack.c.bf16 %v848_v62, %v846_v0  ;;  %v871_v15 = vpack.c.bf16 %v847_v61, %v845_v5  ;;  %v2631_v61 = vld [vmem:[%s4178_s26 + $0x14] ss:$8 sps:$4 sm:$0xff]   ;;  %v883_v62 = vld [vmem:[%s4178_s26 + $0x20] sm:$0xff] }
  0xb5   : > { %v796_v17 = vsel %vm794_vm6, %v789_v13, %v793_v58  ;;  %v798_v19 = vsel %vm794_vm6, %v793_v58, %v789_v13  ;;  %v2481_v0 = vcombine.high %v883_v62, %v883_v62  ;;  %v2480_v5 = vcombine.low %v883_v62, %v883_v62 }
  0xb6   : > { %v851_v20 = vmul.f32 %v796_v17, %v709_v63  ;;  %v852_v21 = vmul.f32 %v798_v19, %v710_v7  ;;  %953 = vmatprep.subr.bf16.mxu0 %v872_v14  ;;  %v2633_v63 = vld [vmem:[%s4178_s26 + $0x10] ss:$8 sps:$4 sm:$0xff]  }
  0xb7   : > { %v802_v16 = vpop.permute.xlu1 %801  ;;  %954 = vmatpush1.bf16.msra.mxu0 %v871_v15 }
  0xb8   : > { %v2618_v24 = vpop.permute.xlu0 %2617  ;;  %v874_v25 = vpack.c.bf16 %v852_v21, %v850_v22  ;;  %v873_v26 = vpack.c.bf16 %v851_v20, %v849_v23 }
  0xb9   : > { %v2620_v28 = vunpack.i.h.bf16 %v2618_v24  ;;  %v2619_v29 = vunpack.i.l.bf16 %v2618_v24 }
  0xba   : > { %955 = vmatprep.subr.bf16.mxu0 %v874_v25 }
  0xbb   : > { %v2623_v27 = vpop.permute.xlu1 %2622  ;;  %956 = vmatpush1.bf16.msra.mxu0 %v873_v26  ;;  %v810_v35 = vsel %vm807_vm7, %v2620_v28, %v2619_v29  ;;  %v808_v37 = vsel %vm807_vm7, %v2619_v29, %v2620_v28 }
  0xbc   : > { %v2625_v31 = vunpack.i.h.bf16 %v2623_v27  ;;  %v2624_v32 = vunpack.i.l.bf16 %v2623_v27  ;;  %v806_v38 = vpop.permute.xlu0 %805  ;;  %v854_v44 = vmul.f32 %v810_v35, %v712_v34  ;;  %v853_v45 = vmul.f32 %v808_v37, %v711_v36 }
  0xbd   : > { %v809_v39 = vsel %vm807_vm7, %v802_v16, %v806_v38  ;;  %v811_v40 = vsel %vm807_vm7, %v806_v38, %v802_v16 }
  0xbe   : > { %v855_v41 = vmul.f32 %v809_v39, %v713_v30  ;;  %v856_v42 = vmul.f32 %v811_v40, %v714_v33  ;;  %v823_v48 = vsel %vm820_vm8, %v2625_v31, %v2624_v32  ;;  %v821_v2 = vsel %vm820_vm8, %v2624_v32, %v2625_v31 }
  0xbf   : > { %v819_v43 = vpop.permute.xlu1 %818  ;;  %v858_v56 = vmul.f32 %v823_v48, %v716_v47  ;;  %v857_v57 = vmul.f32 %v821_v2, %v715_v49 }
  0xc0   : > { %v815_v3 = vpop.permute.xlu0 %814  ;;  %v876_v50 = vpack.c.bf16 %v856_v42, %v854_v44  ;;  %v875_v51 = vpack.c.bf16 %v855_v41, %v853_v45 }
  0xc1   : > { %v822_v52 = vsel %vm820_vm8, %v815_v3, %v819_v43  ;;  %v824_v53 = vsel %vm820_vm8, %v819_v43, %v815_v3 }
  0xc2   : > { %v859_v54 = vmul.f32 %v822_v52, %v717_v4  ;;  %v860_v55 = vmul.f32 %v824_v53, %v718_v46  ;;  %957 = vmatprep.subr.bf16.mxu0 %v876_v50  ;;  %v2636_v50 = vld [vmem:[%s4181_s25] sm:$0xff]   ;;  %v2638_v52 = vld [vmem:[%s4181_s25 + $0x10] ss:$0 sps:$4 sm:$0xff]  }
  0xc3   : > { %958 = vmatpush1.bf16.msra.mxu0 %v875_v51  ;;  %v2637_v51 = vld [vmem:[%s4181_s25 + $0x8] sm:$0xff]  }
  0xc4   : > { %v878_v58 = vpack.c.bf16 %v860_v55, %v858_v56  ;;  %v877_v59 = vpack.c.bf16 %v859_v54, %v857_v57 }
  0xc6   : > { %959 = vmatprep.subr.bf16.mxu0 %v878_v58 }
  0xc7   : > { %960 = vmatpush1.bf16.msra.mxu0 %v877_v59 }
  0xca   : > { %976 = vmatmul.mubr.bf16.vlgmr.msra.gmra.mrb[0].mxu0 %v2628_v60 }
  0xcb   : > { %2483 = vmatprep.mubr.msk.bf16.mxu0 %vm933_vm0, %v2631_v61 }
  0xd0   : > { %v892_v12 = vpop.permute.xlu1 %891 }
  0xd1   : > { %v887_v7 = vpop.permute.xlu0 %886 }
  0xd2   : > { %986 = vmatmul.mubr.bf16.gmra.mrb[4].mxu0 %v2633_v63 }
  0xd3   : > { %2484 = vmatprep.mubr.msk.bf16.mxu0 %vm933_vm0, %v2481_v0 }
  0xd4   : > { %v897_v19 = vpop.permute.xlu1 %896 }
  0xd5   : > { %v902_v23 = vpop.permute.xlu0 %901 }
  0xd8   : > { %v907_v33 = vpop.permute.xlu1 %906 }
  0xd9   : > { %v1028_v60 = vpop.permute.xlu0 %1027 }
  0xda   : > { %996 = vmatmul.mubr.bf16.gmra.mrb[8].mxu0 %v2480_v5 }
  0xdc   : > { %v1043_v58 = vpop.permute.xlu1 %1042 }
 0x19d   : > { %v977_v8 = vpop.f32.mrb[0].mxu0 }
 0x19e   : > { %v978_v9 = vadd.f32 %v977_v8, %v887_v7  ;;  %v979_v11 = vpop.f32.mrb[1].mxu0 }
 0x19f   : > { %v980_v13 = vadd.f32 %v979_v11, %v887_v7  ;;  %v981_v14 = vpop.f32.mrb[2].mxu0 }
 0x1a0   : > { %2650 = vtanh.f32 %v978_v9  ;;  %v982_v15 = vadd.f32 %v981_v14, %v892_v12  ;;  %v983_v16 = vpop.f32.mrb[3].mxu0 }
 0x1a1   : > { %2652 = vtanh.f32 %v980_v13  ;;  %v984_v17 = vadd.f32 %v983_v16, %v892_v12 }
 0x1a2   : > { %2654 = vtanh.f32 %v982_v15 }
 0x1a3   : > { %2656 = vtanh.f32 %v984_v17 }
 0x1a5   : > { %v987_v20 = vpop.f32.mrb[4].mxu0 }
 0x1a6   : > { %v988_v21 = vadd.f32 %v987_v20, %v897_v19  ;;  %v989_v22 = vpop.f32.mrb[5].mxu0 }
 0x1a7   : > { %v990_v24 = vadd.f32 %v989_v22, %v897_v19  ;;  %v991_v25 = vpop.f32.mrb[6].mxu0  ;;  %v678_v22 = vld [vmem:[%s4179_s6 + $0x48] sm:$0xff] }
 0x1a8   : > { %2658 = vtanh.f32 %v988_v21  ;;  %v992_v26 = vadd.f32 %v991_v25, %v902_v23  ;;  %v993_v27 = vpop.f32.mrb[7].mxu0 }
 0x1a9   : > { %2660 = vtanh.f32 %v990_v24  ;;  %v994_v28 = vadd.f32 %v993_v27, %v902_v23  ;;  %v676_v24 = vld [vmem:[%s4179_s6 + $0x38] sm:$0xff] }
 0x1aa   : > { %v2651_v29 = vpop.eup %2650  ;;  %2662 = vtanh.f32 %v992_v26 }
 0x1ab   : > { %v2653_v30 = vpop.eup %2652  ;;  %2664 = vtanh.f32 %v994_v28  ;;  %v680_v28 = vld [vmem:[%s4179_s6 + $0x58] sm:$0xff] }
 0x1ac   : > { %v2655_v31 = vpop.eup %2654 }
 0x1ad   : > { %v2657_v32 = vpop.eup %2656  ;;  %v997_v34 = vpop.f32.mrb[8].mxu0  ;;  %v1019_v35 = vpack.c.bf16 %v2655_v31, %v2651_v29  ;;  %v3310_v29 = vld [vmem:[#allocation3] sm:$0xff]  ;;  %v1380_v31 = vld [vmem:[%s4132_s12 + $0x8] sm:$0xff] }
 0x1ae   : > { %v998_v36 = vadd.f32 %v997_v34, %v907_v33  ;;  %v999_v37 = vpop.f32.mrb[9].mxu0  ;;  %v1020_v38 = vpack.c.bf16 %v2657_v32, %v2653_v30  ;;  %v3314_v30 = vld [vmem:[#allocation3 + $0x8] sm:$0xff] }
 0x1af   : > { %v1000_v39 = vadd.f32 %v999_v37, %v907_v33  ;;  %v1001_v40 = vpop.f32.mrb[10].mxu0  ;;  %v1382_v32 = vld [vmem:[%s4132_s12 + $0x18] sm:$0xff]  ;;  %v1384_v33 = vld [vmem:[%s4132_s12 + $0x28] sm:$0xff] }
 0x1b0   : > { %2666 = vtanh.f32 %v998_v36  ;;  %v1002_v41 = vpop.f32.mrb[11].mxu0  ;;  %1080 = vmatprep.subr.bf16.mxu1 %v1020_v38  ;;  %v3358_v36 = vld [vmem:[%s4133_s13] sm:$0xff]  ;;  %v3363_v37 = vld [vmem:[%s4133_s13 + $0x8] sm:$0xff] }
 0x1b1   : > { %2668 = vtanh.f32 %v1000_v39  ;;  %1081 = vmatpush1.bf16.msra.mxu1 %v1019_v35  ;;  %v3372_v41 = vld [vmem:[%s4133_s13 + $0x10] sm:$0xff] }
 0x1b2   : > { %v2659_v42 = vpop.eup %2658 }
 0x1b3   : > { %v2661_v43 = vpop.eup %2660 }
 0x1b4   : > { %v2663_v4 = vpop.eup %2662 }
 0x1b5   : > { %v2665_v44 = vpop.eup %2664  ;;  %v1021_v45 = vpack.c.bf16 %v2663_v4, %v2659_v42  ;;  %v3377_v42 = vld [vmem:[%s4133_s13 + $0x18] sm:$0xff] }
 0x1b6   : > { %v1022_v46 = vpack.c.bf16 %v2665_v44, %v2661_v43 }
 0x1b8   : > { %1082 = vmatprep.subr.bf16.mxu1 %v1022_v46 }
 0x1b9   : > { %1083 = vmatpush1.bf16.msra.mxu1 %v1021_v45 }
 0x1ba   : > { %v2667_v47 = vpop.eup %2666 }
 0x1bb   : > { %v2669_v48 = vpop.eup %2668  ;;  %v1023_v49 = vpack.c.bf16 %v2667_v47, %v2667_v47 }
 0x1bc   : > { %v1024_v2 = vpack.c.bf16 %v2669_v48, %v2669_v48 }
 0x1bd   : > { %v1075_v3 = vsel %vm1073_vm9, %v1023_v49, 0 }
 0x1be   : > { %2488 = vmatprep.subr.msk.bf16.mxu1 %vm1073_vm9, %v1024_v2 }
 0x1bf   : > { %1085 = vmatpush1.bf16.msra.mxu1 %v1075_v3 }
 0x1c2   : > { %2489 = vmatmul.mubr.msk.bf16.vlgmr.msra.gmra.mrb[0].mxu1 %vm1063_vm10, %v2636_v50 }
 0x1c3   : > { %1122 = vmatprep.mubr.bf16.mxu1 %v2807_v10 }
 0x1ca   : > { %2490 = vmatmul.mubr.msk.bf16.gmra.mrb[4].mxu1 %vm1063_vm10, %v2637_v51  ;;  %v3390_v51 = vld [vmem:[%s4133_s13 + $0x20] sm:$0xff] }
 0x1cb   : > { %1132 = vmatprep.mubr.bf16.mxu1 %v2807_v10 }
 0x1d2   : > { %2491 = vmatmul.mubr.msk.bf16.gmra.mrb[8].mxu1 %vm1063_vm10, %v2638_v52  ;;  %v3395_v52 = vld [vmem:[%s4133_s13 + $0x28] sm:$0xff] }
 0x1d3   : > { %1295 = vmatprep.mubr.bf16.mxu1 %v2807_v10 }
 0x295   : > { %v1114_v53 = vpop.f32.mrb[0].mxu1 }
 0x296   : > { %v1116_v54 = vpop.f32.mrb[1].mxu1  ;;  %v1115_v62 = vadd.f32 %v1114_v53, %v1028_v60 }
 0x297   : > { %v3245_v55 = vpop.f32.mrb[2].mxu1  ;;  %v1117_v5 = vadd.f32 %v1116_v54, %v1028_v60  ;;  %v3404_v60 = vld [vmem:[%s4133_s13 + $0x30] sm:$0xff] }
 0x298   : > { %v3247_v56 = vpop.f32.mrb[3].mxu1 }
 0x29d   : > { %v3249_v57 = vpop.f32.mrb[4].mxu1 }
 0x29e   : > { %v3251_v59 = vpop.f32.mrb[5].mxu1 }
 0x29f   : > { %v1128_v61 = vpop.f32.mrb[6].mxu1 }
 0x2a0   : > { %v1129_v63 = vadd.f32 %v1128_v61, %v1043_v58  ;;  %v1130_v0 = vpop.f32.mrb[7].mxu1  ;;  %v3409_v61 = vld [vmem:[%s4133_s13 + $0x38] sm:$0xff] }
 0x2a1   : > { %v1131_v7 = vadd.f32 %v1130_v0, %v1043_v58 }
 0x2a2   : > { %v1141_v8 = vadd.f32 %v1129_v63, %v1115_v62 }
 0x2a3   : > { %v1142_v9 = vadd.f32 %v1131_v7, %v1117_v5 }
 0x2a4   : > { %v2492_v11 = vmul.f32 -1.442695, %v1141_v8 }
 0x2a5   : > { %v2493_v12 = vmul.f32 -1.442695, %v1142_v9  ;;  %v3300_v23 = vpop.f32.mrb[8].mxu1 }
 0x2a6   : > { %2670 = vpow2.f32 %v2492_v11  ;;  %v3305_v25 = vpop.f32.mrb[9].mxu1  ;;  %v3422_v11 = vld [vmem:[%s4133_s13 + $0x40] sm:$0xff] }
 0x2a7   : > { %2672 = vpow2.f32 %v2493_v12  ;;  %v1138_v26 = vpop.f32.mrb[10].mxu1 }
 0x2a8   : > { %v1139_v27 = vpop.f32.mrb[11].mxu1 }
 0x2b0   : > { %v2671_v13 = vpop.eup %2670 }
 0x2b1   : > { %v2673_v14 = vpop.eup %2672  ;;  %v1149_v15 = vadd.f32 1.0, %v2671_v13  ;;  %v3427_v13 = vld [vmem:[%s4133_s13 + $0x50] sm:$0xff] }
 0x2b2   : > { %v1150_v16 = vadd.f32 1.0, %v2673_v14  ;;  %v3432_v14 = vld [vmem:[%s4133_s13 + $0x58] sm:$0xff] }
 0x2b3   : > { %2674 = vrcp.f32 %v1149_v15  ;;  %v3437_v15 = vld [vmem:[%s4133_s13 + $0x48] sm:$0xff] }
 0x2b4   : > { %2676 = vrcp.f32 %v1150_v16 }
 0x2bd   : > { %v2675_v17 = vpop.eup %2674 }
 0x2be   : > { %v2677_v19 = vpop.eup %2676  ;;  %v3254_v20 = vmul.f32 %v2675_v17, %v2960_v6  ;;  %v675_v6 = vld [vmem:[%s4179_s6 + $0x30] sm:$0xff] }
 0x2bf   : > { %v3257_v21 = vmul.f32 %v2677_v19, %v2946_v1  ;;  %v679_v1 = vld [vmem:[%s4179_s6 + $0x50] sm:$0xff]  ;;  %s4190_s6 = sld [smem:[#allocation13_spill]] }
 0x2c0   : > { %1171 = vrot.lane.b32.xlu0 %v3254_v20, %s4160_s30 }
 0x2c1   : > { %1173 = vrot.lane.b32.xlu1 %v3257_v21, %s4160_s30  ;;  %s4189_s30 = smov 16   ;;  %v1228_v27 = vmul.f32 %v3257_v21, %v3437_v15 }
 0x2c4   : > { %1177 = vrot.lane.b32.xlu0 %v3254_v20, %s4158_s0 }
 0x2c5   : > { %1179 = vrot.lane.b32.xlu1 %v3257_v21, %s4158_s0 }
 0x2c8   : > { %1183 = vrot.lane.b32.xlu0 %v3254_v20, %s4182_s27 }
 0x2c9   : > { %1185 = vrot.lane.b32.xlu1 %v3257_v21, %s4182_s27 }
 0x2cc   : > { %1189 = vrot.lane.b32.xlu0 %v3254_v20, %s4183_s28 }
 0x2cd   : > { %1191 = vrot.lane.b32.xlu1 %v3257_v21, %s4183_s28 }
 0x2d0   : > { %1195 = vrot.lane.b32.xlu0 %v3254_v20, %s4184_s29 }
 0x2d1   : > { %1197 = vrot.lane.b32.xlu1 %v3257_v21, %s4184_s29 }
 0x2d4   : > { %1201 = vrot.lane.b32.xlu0 %v3254_v20, %s4185_s20 }
 0x2d5   : > { %1203 = vrot.lane.b32.xlu1 %v3257_v21, %s4185_s20 }
 0x2d8   : > { %1207 = vrot.lane.b32.xlu0 %v3254_v20, %s4186_s21 }
 0x2d9   : > { %1209 = vrot.lane.b32.xlu1 %v3257_v21, %s4186_s21 }
 0x2dc   : > { %1213 = vrot.lane.b32.xlu0 %v3254_v20, %s4187_s3 }
 0x2dd   : > { %1215 = vrot.lane.b32.xlu1 %v3257_v21, %s4187_s3 }
 0x2e0   : > { %1250 = vperm.xlu0 %2626, %v679_v1  }
 0x2e1   : > { %1032 = vperm.xlu1 %2627, %v675_v6  }
 0x2e4   : > { %1047 = vperm.xlu0 %2626, %v678_v22   ;;  %v1227_v22 = vmul.f32 %v3254_v20, %v3422_v11  ;;  %v3457_v20 = vld [vmem:[%s4133_s13 + $0x68] sm:$0xff] }
 0x2e5   : > { %1037 = vperm.xlu1 %2627, %v676_v24  }
 0x2e8   : > { %1311 = vperm.xlu0 %2626, %v680_v28  }
 0x2ec   : > { %1431 = vrot.lane.b32.xlu0 %v3310_v29, %s4188_s19 }
 0x2f0   : > { %1435 = vrot.lane.b32.xlu0 %v3314_v30, %s4188_s19 }
 0x2f4   : > { %1443 = vrot.lane.b32.xlu0 %v3310_v29, %s4189_s30 }
 0x2f8   : > { %1447 = vrot.lane.b32.xlu0 %v3314_v30, %s4189_s30 }
 0x2fc   : > { %1455 = vrot.lane.b32.xlu0 %v3310_v29, %s4182_s27 }
 0x300   : > { %1459 = vrot.lane.b32.xlu0 %v3314_v30, %s4182_s27 }
 0x304   : > { %1467 = vrot.lane.b32.xlu0 %v3310_v29, %s4183_s28 }
 0x308   : > { %1471 = vrot.lane.b32.xlu0 %v3314_v30, %s4183_s28 }
 0x30c   : > { %1479 = vrot.lane.b32.xlu0 %v3310_v29, %s4184_s29 }
 0x310   : > { %1483 = vrot.lane.b32.xlu0 %v3314_v30, %s4184_s29 }
 0x314   : > { %1491 = vrot.lane.b32.xlu0 %v3310_v29, %s4185_s20 }
 0x318   : > { %1495 = vrot.lane.b32.xlu0 %v3314_v30, %s4185_s20 }
 0x31c   : > { %1503 = vrot.lane.b32.xlu0 %v3310_v29, %s4186_s21 }
 0x320   : > { %1507 = vrot.lane.b32.xlu0 %v3314_v30, %s4186_s21 }
 0x324   : > { %1515 = vrot.lane.b32.xlu0 %v3310_v29, %s4187_s3 }
 0x328   : > { %1519 = vrot.lane.b32.xlu0 %v3314_v30, %s4187_s3 }
 0x32c   : > { %1591 = vperm.xlu0 %2626, %v1380_v31  }
 0x330   : > { %1601 = vperm.xlu0 %2626, %v1382_v32  }
 0x332   : > { %v1172_v34 = vpop.permute.xlu0 %1171 }
 0x333   : > { %v1174_v35 = vpop.permute.xlu1 %1173 }
 0x334   : > { %1726 = vperm.xlu0 %2626, %v1384_v33   ;;  %v1175_v38 = vsel %vm729_vm1, %v1172_v34, %v1174_v35  ;;  %v1176_v39 = vsel %vm729_vm1, %v1174_v35, %v1172_v34  ;;  %v3452_v34 = vld [vmem:[%s4133_s13 + $0x60] sm:$0xff] }
 0x335   : > { %v1219_v45 = vmul.f32 %v1176_v39, %v3358_v36  ;;  %v1220_v46 = vmul.f32 %v1175_v38, %v3363_v37  ;;  %v3466_v39 = vld [vmem:[%s4133_s13 + $0x70] sm:$0xff] }
 0x336   : > { %v1178_v40 = vpop.permute.xlu0 %1177 }
 0x337   : > { %v1180_v43 = vpop.permute.xlu1 %1179 }
 0x338   : > { %v1181_v4 = vsel %vm742_vm2, %v1178_v40, %v1180_v43  ;;  %v1182_v44 = vsel %vm742_vm2, %v1180_v43, %v1178_v40  ;;  %v3471_v40 = vld [vmem:[%s4133_s13 + $0x78] sm:$0xff] }
 0x339   : > { %v1221_v47 = vmul.f32 %v1182_v44, %v3372_v41  ;;  %v1222_v48 = vmul.f32 %v1181_v4, %v3377_v42 }
 0x33a   : > { %v1184_v49 = vpop.permute.xlu0 %1183 }
 0x33b   : > { %v1237_v2 = vpack.c.bf16 %v1221_v47, %v1219_v45  ;;  %v1186_v3 = vpop.permute.xlu1 %1185  ;;  %v1238_v50 = vpack.c.bf16 %v1222_v48, %v1220_v46 }
 0x33c   : > { %v1187_v53 = vsel %vm755_vm3, %v1184_v49, %v1186_v3  ;;  %v1188_v54 = vsel %vm755_vm3, %v1186_v3, %v1184_v49  ;;  %v3489_v3 = vld [vmem:[%s4133_s13 + $0x88] sm:$0xff] }
 0x33d   : > { %1263 = vmatprep.subr.bf16.mxu1 %v1238_v50  ;;  %v1223_v5 = vmul.f32 %v1188_v54, %v3390_v51  ;;  %v1224_v7 = vmul.f32 %v1187_v53, %v3395_v52 }
 0x33e   : > { %v1190_v58 = vpop.permute.xlu0 %1189  ;;  %1264 = vmatpush1.bf16.msra.mxu1 %v1237_v2  ;;  %v3484_v2 = vld [vmem:[%s4133_s13 + $0x80] sm:$0xff] }
 0x33f   : > { %v1192_v62 = vpop.permute.xlu1 %1191 }
 0x340   : > { %v1193_v63 = vsel %vm768_vm4, %v1190_v58, %v1192_v62  ;;  %v1194_v0 = vsel %vm768_vm4, %v1192_v62, %v1190_v58 }
 0x341   : > { %v1225_v8 = vmul.f32 %v1194_v0, %v3404_v60  ;;  %v1226_v9 = vmul.f32 %v1193_v63, %v3409_v61 }
 0x342   : > { %v1196_v12 = vpop.permute.xlu0 %1195 }
 0x343   : > { %v1239_v16 = vpack.c.bf16 %v1225_v8, %v1223_v5  ;;  %v1198_v17 = vpop.permute.xlu1 %1197  ;;  %v1240_v19 = vpack.c.bf16 %v1226_v9, %v1224_v7  ;;  %v1247_v9 = vld [vmem:[%s4124_s4] sm:$0xf] }
 0x344   : > { %v1199_v1 = vsel %vm781_vm5, %v1196_v12, %v1198_v17  ;;  %v1200_v6 = vsel %vm781_vm5, %v1198_v17, %v1196_v12 }
 0x345   : > { %v1229_v24 = vmul.f32 %v1199_v1, %v3427_v13  ;;  %v1230_v26 = vmul.f32 %v1200_v6, %v3432_v14  ;;  %1265 = vmatprep.subr.bf16.mxu1 %v1240_v19 }
 0x346   : > { %v1202_v28 = vpop.permute.xlu0 %1201  ;;  %1266 = vmatpush1.bf16.msra.mxu1 %v1239_v16 }
 0x347   : > { %v1241_v31 = vpack.c.bf16 %v1229_v24, %v1227_v22  ;;  %v1204_v32 = vpop.permute.xlu1 %1203  ;;  %v1242_v33 = vpack.c.bf16 %v1230_v26, %v1228_v27 }
 0x348   : > { %v1205_v35 = vsel %vm794_vm6, %v1202_v28, %v1204_v32  ;;  %v1206_v21 = vsel %vm794_vm6, %v1204_v32, %v1202_v28 }
 0x349   : > { %1267 = vmatprep.subr.bf16.mxu1 %v1242_v33  ;;  %v1231_v45 = vmul.f32 %v1205_v35, %v3452_v34  ;;  %v1232_v46 = vmul.f32 %v1206_v21, %v3457_v20 }
 0x34a   : > { %v1208_v38 = vpop.permute.xlu0 %1207  ;;  %1268 = vmatpush1.bf16.msra.mxu1 %v1241_v31 }
 0x34b   : > { %v1210_v43 = vpop.permute.xlu1 %1209 }
 0x34c   : > { %v1211_v4 = vsel %vm807_vm7, %v1208_v38, %v1210_v43  ;;  %v1212_v44 = vsel %vm807_vm7, %v1210_v43, %v1208_v38 }
 0x34d   : > { %v1233_v47 = vmul.f32 %v1211_v4, %v3466_v39  ;;  %v1234_v48 = vmul.f32 %v1212_v44, %v3471_v40 }
 0x34e   : > { %v1214_v49 = vpop.permute.xlu0 %1213 }
 0x34f   : > { %v1243_v50 = vpack.c.bf16 %v1233_v47, %v1231_v45  ;;  %v1216_v53 = vpop.permute.xlu1 %1215  ;;  %v1244_v54 = vpack.c.bf16 %v1234_v48, %v1232_v46 }
 0x350   : > { %v1217_v58 = vsel %vm820_vm8, %v1214_v49, %v1216_v53  ;;  %v1218_v62 = vsel %vm820_vm8, %v1216_v53, %v1214_v49 }
 0x351   : > { %v1235_v63 = vmul.f32 %v1217_v58, %v3484_v2  ;;  %v1236_v0 = vmul.f32 %v1218_v62, %v3489_v3  ;;  %1269 = vmatprep.subr.bf16.mxu1 %v1244_v54 }
 0x352   : > { %1270 = vmatpush1.bf16.msra.mxu1 %v1243_v50 }
 0x353   : > { %v1245_v5 = vpack.c.bf16 %v1235_v63, %v1235_v63  ;;  %v1246_v7 = vpack.c.bf16 %v1236_v0, %v1236_v0 }
 0x355   : > { %2496 = vmatprep.subr.msk.bf16.mxu1 %vm1073_vm9, %v1246_v7  ;;  %v1258_v8 = vsel %vm1073_vm9, %v1245_v5, 0 }
 0x356   : > { %1272 = vmatpush1.bf16.msra.mxu1 %v1258_v8 }
 0x359   : > { %2497 = vmatmul.mubr.msk.bf16.vlgmr.msra.gmra.mrb[12].mxu1 %vm1253_vm11, %v1247_v9 }
 0x35a   : > { %1356 = vmatprep.mubr.bf16.mxu1 %v2807_v10 }
 0x35f   : > { %v1251_v12 = vpop.permute.xlu0 %1250 }
 0x360   : > { %v1033_v16 = vpop.permute.xlu1 %1032 }
 0x361   : > { %v1119_v19 = vadd.f32 %v3245_v55, %v1033_v16  ;;  %v1121_v1 = vadd.f32 %v3247_v56, %v1033_v16 }
 0x363   : > { %v1048_v17 = vpop.permute.xlu0 %1047 }
 0x364   : > { %v1135_v6 = vadd.f32 %v3300_v23, %v1048_v17  ;;  %v1137_v22 = vadd.f32 %v3305_v25, %v1048_v17  ;;  %v1304_v23 = vld [vmem:[%s4125_s5] sm:$0xf]  ;;  %v1038_v48 = vpop.permute.xlu1 %1037 }
 0x365   : > { %v1125_v53 = vadd.f32 %v3249_v57, %v1038_v48  ;;  %v1127_v62 = vadd.f32 %v3251_v59, %v1038_v48  ;;  %v2754_v57 = vld [vmem:[#allocation2] sm:$0xff] }
 0x366   : > { %v1155_v24 = vadd.f32 %v1135_v6, %v1119_v19  ;;  %v1156_v26 = vadd.f32 %v1137_v22, %v1121_v1 }
 0x367   : > { %v1312_v49 = vpop.permute.xlu0 %1311 }
 0x368   : > { %v2494_v25 = vmul.f32 -1.442695, %v1155_v24  ;;  %v2495_v4 = vmul.f32 -1.442695, %v1156_v26  ;;  %v2755_v26 = vld [vmem:[#allocation2 + $0x8] sm:$0xff] }
 0x42c   : > { %v1297_v27 = vpop.f32.mrb[12].mxu1 }
 0x42d   : > { %v1298_v28 = vadd.f32 %v1297_v27, %v1251_v12  ;;  %v1299_v31 = vpop.f32.mrb[13].mxu1 }
 0x42e   : > { %v1300_v32 = vadd.f32 %v1299_v31, %v1251_v12  ;;  %v1301_v33 = vpop.f32.mrb[14].mxu1  ;;  %v2641_v31 = vld [vmem:[%s4128_s8 + $0x4] ss:$8 sps:$4 sm:$0xff]  }
 0x42f   : > { %2678 = vtanh.f32 %v1298_v28  ;;  %v1302_v35 = vpop.f32.mrb[15].mxu1  ;;  %2506 = vmatprep.mubr.msk.bf16.mxu0 %vm933_vm0, %v2641_v31  ;;  %v1381_v33 = vld [vmem:[%s4132_s12 + $0x10] sm:$0xff]  ;;  %v1397_v31 = vld [vmem:[%s4127_s7 + $0x20] sm:$0xff] }
 0x430   : > { %2680 = vtanh.f32 %v1300_v32  ;;  %v1379_v32 = vld [vmem:[%s4132_s12] sm:$0xff] }
 0x431   : > { %2682 = vpow2.f32 %v2494_v25  ;;  %v1383_v35 = vld [vmem:[%s4132_s12 + $0x20] sm:$0xff] }
 0x432   : > { %2684 = vpow2.f32 %v2495_v4 }
 0x439   : > { %v2679_v21 = vpop.eup %2678 }
 0x43a   : > { %v2681_v38 = vpop.eup %2680  ;;  %v1307_v43 = vpack.c.bf16 %v2679_v21, %v2679_v21  ;;  %v1387_v21 = vld [vmem:[%s4132_s12 + $0x40] sm:$0xff] }
 0x43b   : > { %v1308_v55 = vpack.c.bf16 %v2681_v38, %v2681_v38  ;;  %v2683_v44 = vpop.eup %2682  ;;  %v1432_v38 = vpop.permute.xlu0 %1431 }
 0x43c   : > { %v1319_v56 = vsel %vm1073_vm9, %v1307_v43, 0  ;;  %v2685_v45 = vpop.eup %2684  ;;  %v1163_v46 = vadd.f32 1.0, %v2683_v44 }
 0x43d   : > { %2498 = vmatprep.subr.msk.bf16.mxu1 %vm1073_vm9, %v1308_v55  ;;  %v1164_v47 = vadd.f32 1.0, %v2685_v45 }
 0x43e   : > { %1325 = vmatpush1.bf16.msra.mxu1 %v1319_v56  ;;  %2686 = vrcp.f32 %v1163_v46 }
 0x43f   : > { %2688 = vrcp.f32 %v1164_v47  ;;  %v1436_v43 = vpop.permute.xlu0 %1435 }
 0x441   : > { %2499 = vmatmul.mubr.msk.bf16.vlgmr.msra.gmra.mrb[16].mxu1 %vm1314_vm12, %v1304_v23 }
 0x442   : > { %1809 = vmatprep.mubr.bf16.mxu1 %v2807_v10 }
 0x443   : > { %v1444_v55 = vpop.permute.xlu0 %1443 }
 0x447   : > { %v1448_v56 = vpop.permute.xlu0 %1447 }
 0x448   : > { %v2687_v9 = vpop.eup %2686 }
 0x449   : > { %v2689_v12 = vpop.eup %2688  ;;  %v1369_v16 = vsub.f32 1.0, %v2687_v9  ;;  %v1373_v22 = vmul.f32 %v2754_v57, %v2687_v9  ;;  %v1400_v57 = vld [vmem:[%s4127_s7 + $0x38] sm:$0xff] }
 0x44a   : > { %v1370_v19 = vsub.f32 1.0, %v2689_v12  ;;  %v1374_v27 = vmul.f32 %v2755_v26, %v2689_v12 }
 0x44b   : > { %v1456_v23 = vpop.permute.xlu0 %1455 }
 0x44f   : > { %v1460_v25 = vpop.permute.xlu0 %1459 }
 0x453   : > { %v1468_v44 = vpop.permute.xlu0 %1467 }
 0x457   : > { %v1472_v47 = vpop.permute.xlu0 %1471 }
 0x514   : > { %v1358_v50 = vpop.f32.mrb[16].mxu1 }
 0x515   : > { %v1359_v54 = vadd.f32 %v1358_v50, %v1312_v49  ;;  %v1360_v58 = vpop.f32.mrb[17].mxu1 }
 0x516   : > { %v1361_v63 = vadd.f32 %v1360_v58, %v1312_v49  ;;  %v1362_v0 = vpop.f32.mrb[18].mxu1  ;;  %v3573_v49 = vpop.permute.xlu0 %1479 }
 0x517   : > { %v1365_v5 = vadd.f32 %v1359_v54, %v1125_v53  ;;  %v1363_v7 = vpop.f32.mrb[19].mxu1  ;;  %v1438_v0 = vsel %vm729_vm1, %v1432_v38, %v1436_v43 }
 0x518   : > { %v1366_v8 = vadd.f32 %v1361_v63, %v1127_v62  ;;  %v1395_v62 = vld [vmem:[%s4127_s7 + $0x10] sm:$0xff]  ;;  %v1396_v63 = vld [vmem:[%s4127_s7 + $0x18] sm:$0xff]  ;;  %v1393_v7 = vld [vmem:[%s4127_s7] sm:$0xff] }
 0x519   : > { %2690 = vtanh.f32 %v1365_v5  ;;  %v1440_v5 = vsel %vm729_vm1, %v1436_v43, %v1432_v38 }
 0x51a   : > { %2692 = vtanh.f32 %v1366_v8  ;;  %v3579_v54 = vpop.permute.xlu0 %1483  ;;  %v1394_v8 = vld [vmem:[%s4127_s7 + $0x8] sm:$0xff] }
 0x51e   : > { %v3599_v9 = vpop.permute.xlu0 %1491 }
 0x523   : > { %v2691_v17 = vpop.eup %2690 }
 0x524   : > { %v2693_v1 = vpop.eup %2692  ;;  %v1371_v6 = vmul.f32 %v2691_v17, %v1369_v16  ;;  %v1527_v16 = vmul.f32 %v1440_v5, %v1395_v62  ;;  %v1528_v17 = vmul.f32 %v1438_v0, %v1396_v63  ;;  %v1404_v62 = vld [vmem:[%s4127_s7 + $0x58] sm:$0xff]  ;;  %v1462_v63 = vsel %vm755_vm3, %v1456_v23, %v1460_v25  ;;  %v3635_v5 = vpop.permute.xlu0 %1495 }
 0x525   : > { %v1372_v24 = vmul.f32 %v2693_v1, %v1370_v19  ;;  %v1464_v0 = vsel %vm755_vm3, %v1460_v25, %v1456_v23 }
 0x526   : > { %v3517_v59 = vadd.f32 %v1373_v22, %v1371_v6  ;;  %v1399_v6 = vld [vmem:[%s4127_s7 + $0x30] sm:$0xff]  ;;  %v1450_v22 = vsel %vm742_vm2, %v1444_v55, %v1448_v56 }
 0x527   : > { %v3519_v28 = vadd.f32 %v1374_v27, %v1372_v24  ;;  %v1452_v24 = vsel %vm742_vm2, %v1448_v56, %v1444_v55  ;;  %v1532_v43 = vmul.f32 %v1450_v22, %v1400_v57  ;;  %v1403_v56 = vld [vmem:[%s4127_s7 + $0x50] sm:$0xff]  ;;  %v1408_v22 = vld [vmem:[%s4127_s7 + $0x78] sm:$0xff] }
 0x528   : > { %1377 = vst [vmem:[#allocation2] sm:$0xff] %v3517_v59  ;;  %1429 = vrot.lane.b32.xlu1 %v3517_v59, %s4188_s19  ;;  %v1531_v38 = vmul.f32 %v1452_v24, %v1399_v6  ;;  %v1536_v6 = vmul.f32 %v1462_v63, %v1404_v62  ;;  %v1407_v57 = vld [vmem:[%s4127_s7 + $0x70] sm:$0xff]  ;;  %v1474_v24 = vsel %vm768_vm4, %v1468_v44, %v1472_v47 }
 0x529   : > { %1378 = vst [vmem:[#allocation2 + $0x8] sm:$0xff] %v3519_v28 }
 0x52c   : > { %1441 = vrot.lane.b32.xlu1 %v3517_v59, %s4189_s30 }
 0x530   : > { %1453 = vrot.lane.b32.xlu1 %v3517_v59, %s4182_s27 }
 0x534   : > { %1465 = vrot.lane.b32.xlu1 %v3517_v59, %s4183_s28 }
 0x538   : > { %1477 = vrot.lane.b32.xlu1 %v3517_v59, %s4184_s29 }
 0x53c   : > { %1489 = vrot.lane.b32.xlu1 %v3517_v59, %s4185_s20 }
 0x540   : > { %1501 = vrot.lane.b32.xlu1 %v3517_v59, %s4186_s21 }
 0x544   : > { %1433 = vrot.lane.b32.xlu1 %v3519_v28, %s4188_s19 }
 0x548   : > { %1445 = vrot.lane.b32.xlu1 %v3519_v28, %s4189_s30 }
 0x54c   : > { %1457 = vrot.lane.b32.xlu1 %v3519_v28, %s4182_s27 }
 0x550   : > { %1469 = vrot.lane.b32.xlu1 %v3519_v28, %s4183_s28 }
 0x554   : > { %1513 = vrot.lane.b32.xlu1 %v3517_v59, %s4187_s3 }
 0x558   : > { %1481 = vrot.lane.b32.xlu1 %v3519_v28, %s4184_s29 }
 0x55c   : > { %1493 = vrot.lane.b32.xlu1 %v3519_v28, %s4185_s20 }
 0x560   : > { %1505 = vrot.lane.b32.xlu1 %v3519_v28, %s4186_s21 }
 0x564   : > { %1517 = vrot.lane.b32.xlu1 %v3519_v28, %s4187_s3 }
 0x568   : > { %1586 = vperm.xlu1 %2627, %v1379_v32   ;;  %v1398_v32 = vld [vmem:[%s4127_s7 + $0x28] sm:$0xff] }
 0x56c   : > { %1596 = vperm.xlu1 %2627, %v1381_v33  }
 0x570   : > { %1606 = vperm.xlu1 %2627, %v1383_v35  }
 0x574   : > { %1741 = vperm.xlu1 %2627, %v1387_v21  }
 0x59a   : > { %v1430_v4 = vpop.permute.xlu1 %1429 }
 0x59e   : > { %v1442_v45 = vpop.permute.xlu1 %1441 }
 0x5a2   : > { %v1454_v46 = vpop.permute.xlu1 %1453 }
 0x5a6   : > { %v3571_v48 = vpop.permute.xlu1 %1465 }
 0x5aa   : > { %v3575_v50 = vpop.permute.xlu1 %1477 }
 0x5ae   : > { %v3577_v53 = vpop.permute.xlu1 %1489 }
 0x5b2   : > { %v3581_v58 = vpop.permute.xlu1 %1501 }
 0x5b6   : > { %v1434_v12 = vpop.permute.xlu1 %1433 }
 0x5b7   : > { %v1437_v19 = vsel %vm729_vm1, %v1430_v4, %v1434_v12  ;;  %v1439_v1 = vsel %vm729_vm1, %v1434_v12, %v1430_v4  ;;  %v1402_v12 = vld [vmem:[%s4127_s7 + $0x48] sm:$0xff] }
 0x5b8   : > { %v1525_v26 = vmul.f32 %v1439_v1, %v1393_v7  ;;  %v1526_v27 = vmul.f32 %v1437_v19, %v1394_v8  ;;  %v1535_v1 = vmul.f32 %v1464_v0, %v1403_v56 }
 0x5ba   : > { %v1561_v33 = vpack.c.bf16 %v1527_v16, %v1525_v26  ;;  %v1446_v35 = vpop.permute.xlu1 %1445  ;;  %v1562_v21 = vpack.c.bf16 %v1528_v17, %v1526_v27  ;;  %v1476_v26 = vsel %vm768_vm4, %v1472_v47, %v1468_v44  ;;  %v1412_v44 = vld [vmem:[%s4127_s7 + $0x98] sm:$0xff]  ;;  %v1504_v47 = vpop.permute.xlu0 %1503 }
 0x5bb   : > { %v1449_v4 = vsel %vm742_vm2, %v1442_v45, %v1446_v35  ;;  %v1451_v55 = vsel %vm742_vm2, %v1446_v35, %v1442_v45  ;;  %v1401_v45 = vld [vmem:[%s4127_s7 + $0x40] sm:$0xff] }
 0x5bc   : > { %v1529_v7 = vmul.f32 %v1451_v55, %v1397_v31  ;;  %v1530_v8 = vmul.f32 %v1449_v4, %v1398_v32  ;;  %1642 = vmatprep.subr.bf16.mxu0 %v1562_v21  ;;  %v1405_v32 = vld [vmem:[%s4127_s7 + $0x60] sm:$0xff]  ;;  %v1540_v4 = vmul.f32 %v1474_v24, %v1408_v22  ;;  %v1414_v22 = vld [vmem:[%s4127_s7 + $0xa8] sm:$0xff] }
 0x5bd   : > { %1643 = vmatpush1.bf16.msra.mxu0 %v1561_v33  ;;  %v1406_v33 = vld [vmem:[%s4127_s7 + $0x68] sm:$0xff] }
 0x5be   : > { %v1563_v16 = vpack.c.bf16 %v1531_v38, %v1529_v7  ;;  %v1458_v17 = vpop.permute.xlu1 %1457  ;;  %v1564_v19 = vpack.c.bf16 %v1532_v43, %v1530_v8  ;;  %v1539_v43 = vmul.f32 %v1476_v26, %v1407_v57  ;;  %v1544_v7 = vmul.f32 %v1412_v44, %v3314_v30  ;;  %v1409_v8 = vld [vmem:[%s4127_s7 + $0x80] sm:$0xff]  ;;  %v1420_v44 = vld [vmem:[%s4127_s7 + $0xd8] sm:$0xff] }
 0x5bf   : > { %v1461_v23 = vsel %vm755_vm3, %v1454_v46, %v1458_v17  ;;  %v1463_v25 = vsel %vm755_vm3, %v1458_v17, %v1454_v46  ;;  %v1410_v46 = vld [vmem:[%s4127_s7 + $0x88] sm:$0xff]  ;;  %v1541_v17 = vmul.f32 %v1409_v8, %v3517_v59  ;;  %v1488_v59 = vsel %vm781_vm5, %v3579_v54, %v3573_v49  ;;  %v1413_v57 = vld [vmem:[%s4127_s7 + $0xa0] sm:$0xff] }
 0x5c0   : > { %v1533_v27 = vmul.f32 %v1463_v25, %v1401_v45  ;;  %v1534_v31 = vmul.f32 %v1461_v23, %v1402_v12  ;;  %1644 = vmatprep.subr.bf16.mxu0 %v1564_v19  ;;  %v1542_v0 = vmul.f32 %v1410_v46, %v3519_v28  ;;  %v1411_v45 = vld [vmem:[%s4127_s7 + $0x90] sm:$0xff]  ;;  %v1416_v23 = vld [vmem:[%s4127_s7 + $0xb8] sm:$0xff]  ;;  %v1486_v25 = vsel %vm781_vm5, %v3573_v49, %v3579_v54 }
 0x5c1   : > { %1645 = vmatpush1.bf16.msra.mxu0 %v1563_v16  ;;  %v1543_v19 = vmul.f32 %v1411_v45, %v3310_v29  ;;  %v1415_v28 = vld [vmem:[%s4127_s7 + $0xb0] sm:$0xff]  ;;  %v1424_v45 = vld [vmem:[%s4127_s7 + $0xf8] sm:$0xff] }
 0x5c2   : > { %v1565_v35 = vpack.c.bf16 %v1535_v1, %v1533_v27  ;;  %v1470_v21 = vpop.permute.xlu1 %1469  ;;  %v1566_v38 = vpack.c.bf16 %v1536_v6, %v1534_v31  ;;  %v1508_v1 = vpop.permute.xlu0 %1507  ;;  %v1570_v6 = vpack.c.bf16 %v1544_v7, %v1542_v0  ;;  %v1547_v54 = vmul.f32 %v1486_v25, %v1415_v28  ;;  %v1419_v46 = vld [vmem:[%s4127_s7 + $0xd0] sm:$0xff] }
 0x5c3   : > { %v1473_v55 = vsel %vm768_vm4, %v3571_v48, %v1470_v21  ;;  %v1475_v56 = vsel %vm768_vm4, %v1470_v21, %v3571_v48  ;;  %v1569_v49 = vpack.c.bf16 %v1543_v19, %v1541_v17  ;;  %v1548_v31 = vmul.f32 %v1488_v59, %v1416_v23  ;;  %v1417_v21 = vld [vmem:[%s4127_s7 + $0xc0] sm:$0xff]  ;;  %v1423_v0 = vld [vmem:[%s4127_s7 + $0xf0] sm:$0xff]  ;;  %v1422_v17 = vld [vmem:[%s4127_s7 + $0xe8] sm:$0xff] }
 0x5c4   : > { %v1537_v62 = vmul.f32 %v1475_v56, %v1405_v32  ;;  %v1538_v63 = vmul.f32 %v1473_v55, %v1406_v33  ;;  %1646 = vmatprep.subr.bf16.mxu0 %v1566_v38  ;;  %v1418_v38 = vld [vmem:[%s4127_s7 + $0xc8] sm:$0xff]  ;;  %v1427_v59 = vld [vmem:[%s4127_s7 + $0x110] sm:$0xff] }
 0x5c5   : > { %1647 = vmatpush1.bf16.msra.mxu0 %v1565_v35  ;;  %v1498_v35 = vsel %vm794_vm6, %v3599_v9, %v3635_v5 }
 0x5c6   : > { %v1567_v12 = vpack.c.bf16 %v1539_v43, %v1537_v62  ;;  %v3683_v16 = vpop.permute.xlu1 %1513  ;;  %v1568_v48 = vpack.c.bf16 %v1540_v4, %v1538_v63  ;;  %v1516_v43 = vpop.permute.xlu0 %1515 }
 0x5c8   : > { %1648 = vmatprep.subr.bf16.mxu0 %v1568_v48  ;;  %v1512_v48 = vsel %vm807_vm7, %v1508_v1, %v1504_v47 }
 0x5c9   : > { %1649 = vmatpush1.bf16.msra.mxu0 %v1567_v12  ;;  %v1510_v12 = vsel %vm807_vm7, %v1504_v47, %v1508_v1  ;;  %v1556_v25 = vmul.f32 %v1512_v48, %v1424_v45 }
 0x5ca   : > { %1650 = vmatprep.subr.bf16.mxu0 %v1570_v6  ;;  %v1482_v24 = vpop.permute.xlu1 %1481  ;;  %v1555_v1 = vmul.f32 %v1510_v12, %v1423_v0 }
 0x5cb   : > { %v1485_v26 = vsel %vm781_vm5, %v3575_v50, %v1482_v24  ;;  %v1487_v27 = vsel %vm781_vm5, %v1482_v24, %v3575_v50  ;;  %v1500_v50 = vsel %vm794_vm6, %v3635_v5, %v3599_v9  ;;  %v1551_v5 = vmul.f32 %v1498_v35, %v1419_v46 }
 0x5cc   : > { %v1545_v32 = vmul.f32 %v1485_v26, %v1413_v57  ;;  %v1546_v33 = vmul.f32 %v1487_v27, %v1414_v22  ;;  %v1552_v63 = vmul.f32 %v1500_v50, %v1420_v44  ;;  %v1520_v57 = vpop.permute.xlu0 %1519  ;;  %v1428_v26 = vld [vmem:[%s4127_s7 + $0x118] sm:$0xff] }
 0x5cd   : > { %1651 = vmatpush1.bf16.msra.mxu0 %v1569_v49  ;;  %v1522_v27 = vsel %vm820_vm8, %v1516_v43, %v1520_v57  ;;  %v1425_v49 = vld [vmem:[%s4127_s7 + $0x100] sm:$0xff] }
 0x5ce   : > { %v1571_v4 = vpack.c.bf16 %v1547_v54, %v1545_v32  ;;  %v1494_v55 = vpop.permute.xlu1 %1493  ;;  %v1572_v56 = vpack.c.bf16 %v1548_v31, %v1546_v33  ;;  %v1426_v54 = vld [vmem:[%s4127_s7 + $0x108] sm:$0xff]  ;;  %v1559_v35 = vmul.f32 %v1522_v27, %v1427_v59 }
 0x5cf   : > { %v1497_v62 = vsel %vm794_vm6, %v3577_v53, %v1494_v55  ;;  %v1499_v9 = vsel %vm794_vm6, %v1494_v55, %v3577_v53  ;;  %v1421_v53 = vld [vmem:[%s4127_s7 + $0xe0] sm:$0xff] }
 0x5d0   : > { %v1549_v7 = vmul.f32 %v1497_v62, %v1417_v21  ;;  %v1550_v8 = vmul.f32 %v1499_v9, %v1418_v38  ;;  %1652 = vmatprep.subr.bf16.mxu0 %v1572_v56  ;;  %v2639_v55 = vld [vmem:[%s4128_s8] ss:$8 sps:$4 sm:$0xff]   ;;  %v2642_v56 = vld [vmem:[%s4128_s8 + $0x14] ss:$8 sps:$4 sm:$0xff]   ;;  %v2644_v62 = vld [vmem:[%s4128_s8 + $0x10] ss:$8 sps:$4 sm:$0xff]   ;;  %v1592_v45 = vpop.permute.xlu0 %1591 }
 0x5d1   : > { %1653 = vmatpush1.bf16.msra.mxu0 %v1571_v4 }
 0x5d2   : > { %v1573_v19 = vpack.c.bf16 %v1551_v5, %v1549_v7  ;;  %v1506_v28 = vpop.permute.xlu1 %1505  ;;  %v1574_v6 = vpack.c.bf16 %v1552_v63, %v1550_v8 }
 0x5d3   : > { %v1509_v23 = vsel %vm807_vm7, %v3581_v58, %v1506_v28  ;;  %v1511_v47 = vsel %vm807_vm7, %v1506_v28, %v3581_v58  ;;  %v1524_v58 = vsel %vm820_vm8, %v1520_v57, %v1516_v43 }
 0x5d4   : > { %v1553_v22 = vmul.f32 %v1509_v23, %v1421_v53  ;;  %v1554_v24 = vmul.f32 %v1511_v47, %v1422_v17  ;;  %1654 = vmatprep.subr.bf16.mxu0 %v1574_v6  ;;  %v1560_v50 = vmul.f32 %v1524_v58, %v1428_v26 }
 0x5d5   : > { %1655 = vmatpush1.bf16.msra.mxu0 %v1573_v19 }
 0x5d6   : > { %v1575_v31 = vpack.c.bf16 %v1555_v1, %v1553_v22  ;;  %v1518_v46 = vpop.permute.xlu1 %1517  ;;  %v1576_v32 = vpack.c.bf16 %v1556_v25, %v1554_v24  ;;  %v1602_v1 = vpop.permute.xlu0 %1601 }
 0x5d7   : > { %v1521_v33 = vsel %vm820_vm8, %v3683_v16, %v1518_v46  ;;  %v1523_v44 = vsel %vm820_vm8, %v1518_v46, %v3683_v16  ;;  %v1583_v16 = vld [vmem:[%s4128_s8 + $0x20] sm:$0xff] }
 0x5d8   : > { %v1557_v21 = vmul.f32 %v1521_v33, %v1425_v49  ;;  %v1558_v38 = vmul.f32 %v1523_v44, %v1426_v54  ;;  %1656 = vmatprep.subr.bf16.mxu0 %v1576_v32  ;;  %v2505_v9 = vcombine.high %v1583_v16, %v1583_v16  ;;  %v2504_v5 = vcombine.low %v1583_v16, %v1583_v16 }
 0x5d9   : > { %1657 = vmatpush1.bf16.msra.mxu0 %v1575_v31 }
 0x5da   : > { %v1577_v43 = vpack.c.bf16 %v1559_v35, %v1557_v21  ;;  %v1578_v4 = vpack.c.bf16 %v1560_v50, %v1558_v38 }
 0x5dc   : > { %1658 = vmatprep.subr.bf16.mxu0 %v1578_v4 }
 0x5dd   : > { %1659 = vmatpush1.bf16.msra.mxu0 %v1577_v43 }
 0x5e0   : > { %1675 = vmatmul.mubr.bf16.vlgmr.msra.gmra.mrb[12].mxu0 %v2639_v55 }
 0x5e1   : > { %2507 = vmatprep.mubr.msk.bf16.mxu0 %vm933_vm0, %v2642_v56 }
 0x5e7   : > { %v1587_v63 = vpop.permute.xlu1 %1586 }
 0x5e8   : > { %1685 = vmatmul.mubr.bf16.gmra.mrb[16].mxu0 %v2644_v62 }
 0x5e9   : > { %2508 = vmatprep.mubr.msk.bf16.mxu0 %vm933_vm0, %v2505_v9 }
 0x5eb   : > { %v1597_v28 = vpop.permute.xlu1 %1596 }
 0x5ef   : > { %v1607_v54 = vpop.permute.xlu1 %1606 }
 0x5f0   : > { %1695 = vmatmul.mubr.bf16.gmra.mrb[20].mxu0 %v2504_v5 }
 0x5f1   : > { %2338 = vmatprep.mubr.bf16.mxu0 %v2807_v10 }
 0x6b3   : > { %v1676_v0 = vpop.f32.mrb[12].mxu0 }
 0x6b4   : > { %v1677_v7 = vadd.f32 %v1676_v0, %v1587_v63  ;;  %v1678_v8 = vpop.f32.mrb[13].mxu0 }
 0x6b5   : > { %v1679_v12 = vadd.f32 %v1678_v8, %v1587_v63  ;;  %v1680_v48 = vpop.f32.mrb[14].mxu0  ;;  %v2648_v8 = vld [vmem:[%s4129_s9 + $0x8] sm:$0xff]  }
 0x6b6   : > { %2694 = vtanh.f32 %v1677_v7  ;;  %v1681_v53 = vadd.f32 %v1680_v48, %v1592_v45  ;;  %v1682_v17 = vpop.f32.mrb[15].mxu0  ;;  %v2647_v7 = vld [vmem:[%s4129_s9] sm:$0xff]  }
 0x6b7   : > { %2696 = vtanh.f32 %v1679_v12  ;;  %v1683_v19 = vadd.f32 %v1682_v17, %v1592_v45  ;;  %v2649_v45 = vld [vmem:[%s4129_s9 + $0x10] ss:$0 sps:$4 sm:$0xff]  }
 0x6b8   : > { %2698 = vtanh.f32 %v1681_v53 }
 0x6b9   : > { %2700 = vtanh.f32 %v1683_v19 }
 0x6bb   : > { %v1686_v6 = vpop.f32.mrb[16].mxu0 }
 0x6bc   : > { %v1687_v23 = vadd.f32 %v1686_v6, %v1597_v28  ;;  %v1688_v47 = vpop.f32.mrb[17].mxu0 }
 0x6bd   : > { %v1689_v25 = vadd.f32 %v1688_v47, %v1597_v28  ;;  %v1690_v59 = vpop.f32.mrb[18].mxu0  ;;  %v1727_v28 = vpop.permute.xlu0 %1726 }
 0x6be   : > { %2702 = vtanh.f32 %v1687_v23  ;;  %v1691_v57 = vadd.f32 %v1690_v59, %v1602_v1  ;;  %v1692_v22 = vpop.f32.mrb[19].mxu0  ;;  %v1742_v23 = vpop.permute.xlu1 %1741 }
 0x6bf   : > { %2704 = vtanh.f32 %v1689_v25  ;;  %v1693_v24 = vadd.f32 %v1692_v22, %v1602_v1 }
 0x6c0   : > { %v2695_v26 = vpop.eup %2694  ;;  %2706 = vtanh.f32 %v1691_v57 }
 0x6c1   : > { %v2697_v27 = vpop.eup %2696  ;;  %2708 = vtanh.f32 %v1693_v24 }
 0x6c2   : > { %v2699_v58 = vpop.eup %2698 }
 0x6c3   : > { %v2701_v49 = vpop.eup %2700  ;;  %v1696_v31 = vpop.f32.mrb[20].mxu0  ;;  %v1718_v46 = vpack.c.bf16 %v2699_v58, %v2695_v26 }
 0x6c4   : > { %v1697_v32 = vadd.f32 %v1696_v31, %v1607_v54  ;;  %v1698_v33 = vpop.f32.mrb[21].mxu0  ;;  %v1719_v44 = vpack.c.bf16 %v2701_v49, %v2697_v27 }
 0x6c5   : > { %v1699_v35 = vadd.f32 %v1698_v33, %v1607_v54  ;;  %v1700_v50 = vpop.f32.mrb[22].mxu0 }
 0x6c6   : > { %2710 = vtanh.f32 %v1697_v32  ;;  %v1701_v21 = vpop.f32.mrb[23].mxu0  ;;  %1777 = vmatprep.subr.bf16.mxu1 %v1719_v44  ;;  %v1388_v50 = vld [vmem:[%s4132_s12 + $0x48] sm:$0xff] }
 0x6c7   : > { %2712 = vtanh.f32 %v1699_v35  ;;  %1778 = vmatpush1.bf16.msra.mxu1 %v1718_v46 }
 0x6c8   : > { %v2703_v38 = vpop.eup %2702 }
 0x6c9   : > { %v2705_v43 = vpop.eup %2704 }
 0x6ca   : > { %v2707_v4 = vpop.eup %2706 }
 0x6cb   : > { %v2709_v55 = vpop.eup %2708  ;;  %v1720_v56 = vpack.c.bf16 %v2707_v4, %v2703_v38  ;;  %v1386_v38 = vld [vmem:[%s4132_s12 + $0x38] sm:$0xff] }
 0x6cc   : > { %v1721_v16 = vpack.c.bf16 %v2709_v55, %v2705_v43 }
 0x6ce   : > { %1779 = vmatprep.subr.bf16.mxu1 %v1721_v16  ;;  %v2074_v16 = vld [vmem:[%s4138_s18] sm:$0xff] }
 0x6cf   : > { %1780 = vmatpush1.bf16.msra.mxu1 %v1720_v56  ;;  %v1390_v56 = vld [vmem:[%s4132_s12 + $0x58] sm:$0xff] }
 0x6d0   : > { %v2711_v62 = vpop.eup %2710 }
 0x6d1   : > { %v2713_v9 = vpop.eup %2712  ;;  %v1722_v5 = vpack.c.bf16 %v2711_v62, %v2711_v62  ;;  %v2075_v62 = vld [vmem:[%s4138_s18 + $0x8] sm:$0xff] }
 0x6d2   : > { %v1723_v63 = vpack.c.bf16 %v2713_v9, %v2713_v9 }
 0x6d3   : > { %v1772_v0 = vsel %vm1073_vm9, %v1722_v5, 0 }
 0x6d4   : > { %2512 = vmatprep.subr.msk.bf16.mxu1 %vm1073_vm9, %v1723_v63 }
 0x6d5   : > { %1782 = vmatpush1.bf16.msra.mxu1 %v1772_v0 }
 0x6d8   : > { %2513 = vmatmul.mubr.msk.bf16.vlgmr.msra.gmra.mrb[20].mxu1 %vm1063_vm10, %v2647_v7 }
 0x6d9   : > { %1819 = vmatprep.mubr.bf16.mxu1 %v2807_v10 }
 0x6e0   : > { %2514 = vmatmul.mubr.msk.bf16.gmra.mrb[24].mxu1 %vm1063_vm10, %v2648_v8 }
 0x6e1   : > { %1829 = vmatprep.mubr.bf16.mxu1 %v2807_v10 }
 0x6e8   : > { %2515 = vmatmul.mubr.msk.bf16.gmra.mrb[28].mxu1 %vm1063_vm10, %v2649_v45 }
 0x6e9   : > { %1991 = vmatprep.mubr.bf16.mxu1 %v2807_v10 }
 0x7ab   : > { %v1811_v12 = vpop.f32.mrb[20].mxu1 }
 0x7ac   : > { %v1813_v48 = vpop.f32.mrb[21].mxu1  ;;  %v1812_v1 = vadd.f32 %v1811_v12, %v1727_v28 }
 0x7ad   : > { %v3815_v53 = vpop.f32.mrb[22].mxu1  ;;  %v1814_v57 = vadd.f32 %v1813_v48, %v1727_v28 }
 0x7ae   : > { %v3817_v17 = vpop.f32.mrb[23].mxu1 }
 0x7b3   : > { %v3819_v19 = vpop.f32.mrb[24].mxu1 }
 0x7b4   : > { %v3821_v6 = vpop.f32.mrb[25].mxu1 }
 0x7b5   : > { %v1825_v47 = vpop.f32.mrb[26].mxu1 }
 0x7b6   : > { %v1826_v25 = vadd.f32 %v1825_v47, %v1742_v23  ;;  %v1827_v59 = vpop.f32.mrb[27].mxu1 }
 0x7b7   : > { %v1828_v22 = vadd.f32 %v1827_v59, %v1742_v23 }
 0x7b8   : > { %v1838_v24 = vadd.f32 %v1826_v25, %v1812_v1 }
 0x7b9   : > { %v1839_v26 = vadd.f32 %v1828_v22, %v1814_v57 }
 0x7ba   : > { %v2516_v27 = vmul.f32 -1.442695, %v1838_v24 }
 0x7bb   : > { %v2517_v58 = vmul.f32 -1.442695, %v1839_v26  ;;  %v3870_v21 = vpop.f32.mrb[28].mxu1 }
 0x7bc   : > { %2714 = vpow2.f32 %v2516_v27  ;;  %v3875_v43 = vpop.f32.mrb[29].mxu1 }
 0x7bd   : > { %2716 = vpow2.f32 %v2517_v58  ;;  %v1835_v4 = vpop.f32.mrb[30].mxu1 }
 0x7be   : > { %v1836_v55 = vpop.f32.mrb[31].mxu1 }
 0x7c6   : > { %v2715_v49 = vpop.eup %2714 }
 0x7c7   : > { %v2717_v54 = vpop.eup %2716  ;;  %v1846_v31 = vadd.f32 1.0, %v2715_v49 }
 0x7c8   : > { %v1847_v46 = vadd.f32 1.0, %v2717_v54 }
 0x7c9   : > { %2718 = vrcp.f32 %v1846_v31 }
 0x7ca   : > { %2720 = vrcp.f32 %v1847_v46 }
 0x7d3   : > { %v2719_v32 = vpop.eup %2718 }
 0x7d4   : > { %v2721_v33 = vpop.eup %2720  ;;  %v3824_v44 = vmul.f32 %v2719_v32, %v3310_v29  ;;  %v1389_v29 = vld [vmem:[%s4132_s12 + $0x50] sm:$0xff] }
 0x7d5   : > { %v3827_v35 = vmul.f32 %v2721_v33, %v3314_v30  ;;  %v1385_v30 = vld [vmem:[%s4132_s12 + $0x30] sm:$0xff] }
 0x7d6   : > { %1868 = vrot.lane.b32.xlu0 %v3824_v44, %s4188_s19 }
 0x7d7   : > { %1870 = vrot.lane.b32.xlu1 %v3827_v35, %s4188_s19 }
 0x7da   : > { %1874 = vrot.lane.b32.xlu0 %v3824_v44, %s4189_s30 }
 0x7db   : > { %1876 = vrot.lane.b32.xlu1 %v3827_v35, %s4189_s30 }
 0x7de   : > { %1880 = vrot.lane.b32.xlu0 %v3824_v44, %s4182_s27 }
 0x7df   : > { %1882 = vrot.lane.b32.xlu1 %v3827_v35, %s4182_s27 }
 0x7e2   : > { %1886 = vrot.lane.b32.xlu0 %v3824_v44, %s4183_s28 }
 0x7e3   : > { %1888 = vrot.lane.b32.xlu1 %v3827_v35, %s4183_s28 }
 0x7e6   : > { %1892 = vrot.lane.b32.xlu0 %v3824_v44, %s4184_s29 }
 0x7e7   : > { %1894 = vrot.lane.b32.xlu1 %v3827_v35, %s4184_s29 }
 0x7ea   : > { %1898 = vrot.lane.b32.xlu0 %v3824_v44, %s4185_s20 }
 0x7eb   : > { %1900 = vrot.lane.b32.xlu1 %v3827_v35, %s4185_s20 }
 0x7ee   : > { %1904 = vrot.lane.b32.xlu0 %v3824_v44, %s4186_s21 }
 0x7ef   : > { %1906 = vrot.lane.b32.xlu1 %v3827_v35, %s4186_s21 }
 0x7f2   : > { %1910 = vrot.lane.b32.xlu0 %v3824_v44, %s4187_s3 }
 0x7f3   : > { %1912 = vrot.lane.b32.xlu1 %v3827_v35, %s4187_s3 }
 0x7f6   : > { %1947 = vperm.xlu0 %2626, %v1389_v29  }
 0x7f7   : > { %1731 = vperm.xlu1 %2627, %v1385_v30   ;;  %v1924_v30 = vmul.f32 %v3824_v44, %v3422_v11 }
 0x7fa   : > { %1746 = vperm.xlu0 %2626, %v1388_v50  }
 0x7fb   : > { %1736 = vperm.xlu1 %2627, %v1386_v38  }
 0x7fe   : > { %2007 = vperm.xlu0 %2626, %v1390_v56  }
 0x7ff   : > { %2082 = vperm.xlu1 %2627, %v2074_v16  }
 0x802   : > { %2142 = vperm.xlu0 %2626, %v2075_v62  }
 0x848   : > { %v1869_v9 = vpop.permute.xlu0 %1868 }
 0x849   : > { %v1871_v5 = vpop.permute.xlu1 %1870 }
 0x84a   : > { %v1872_v63 = vsel %vm729_vm1, %v1869_v9, %v1871_v5  ;;  %v1873_v0 = vsel %vm729_vm1, %v1871_v5, %v1869_v9 }
 0x84b   : > { %v1916_v48 = vmul.f32 %v1873_v0, %v3358_v36  ;;  %v1917_v28 = vmul.f32 %v1872_v63, %v3363_v37 }
 0x84c   : > { %v1875_v7 = vpop.permute.xlu0 %1874 }
 0x84d   : > { %v1877_v8 = vpop.permute.xlu1 %1876 }
 0x84e   : > { %v1878_v45 = vsel %vm742_vm2, %v1875_v7, %v1877_v8  ;;  %v1879_v12 = vsel %vm742_vm2, %v1877_v8, %v1875_v7 }
 0x84f   : > { %v1918_v23 = vmul.f32 %v1879_v12, %v3372_v41  ;;  %v1919_v47 = vmul.f32 %v1878_v45, %v3377_v42  ;;  %v1944_v12 = vld [vmem:[%s4130_s10] sm:$0xf] }
 0x850   : > { %v1881_v1 = vpop.permute.xlu0 %1880 }
 0x851   : > { %v1934_v25 = vpack.c.bf16 %v1918_v23, %v1916_v48  ;;  %v1883_v59 = vpop.permute.xlu1 %1882  ;;  %v1935_v57 = vpack.c.bf16 %v1919_v47, %v1917_v28 }
 0x852   : > { %v1884_v22 = vsel %vm755_vm3, %v1881_v1, %v1883_v59  ;;  %v1885_v24 = vsel %vm755_vm3, %v1883_v59, %v1881_v1 }
 0x853   : > { %1959 = vmatprep.subr.bf16.mxu1 %v1935_v57  ;;  %v1920_v42 = vmul.f32 %v1885_v24, %v3390_v51  ;;  %v1921_v27 = vmul.f32 %v1884_v22, %v3395_v52 }
 0x854   : > { %1960 = vmatpush1.bf16.msra.mxu1 %v1934_v25  ;;  %v1887_v26 = vpop.permute.xlu0 %1886 }
 0x855   : > { %v1889_v36 = vpop.permute.xlu1 %1888 }
 0x856   : > { %v1890_v37 = vsel %vm768_vm4, %v1887_v26, %v1889_v36  ;;  %v1891_v41 = vsel %vm768_vm4, %v1889_v36, %v1887_v26 }
 0x857   : > { %v1922_v58 = vmul.f32 %v1891_v41, %v3404_v60  ;;  %v1923_v49 = vmul.f32 %v1890_v37, %v3409_v61  ;;  %v1925_v60 = vmul.f32 %v3827_v35, %v3437_v15 }
 0x858   : > { %v1893_v54 = vpop.permute.xlu0 %1892 }
 0x859   : > { %v1936_v31 = vpack.c.bf16 %v1922_v58, %v1920_v42  ;;  %v1895_v46 = vpop.permute.xlu1 %1894  ;;  %v1937_v32 = vpack.c.bf16 %v1923_v49, %v1921_v27 }
 0x85a   : > { %v1896_v33 = vsel %vm781_vm5, %v1893_v54, %v1895_v46  ;;  %v1897_v29 = vsel %vm781_vm5, %v1895_v46, %v1893_v54 }
 0x85b   : > { %v1926_v51 = vmul.f32 %v1896_v33, %v3427_v13  ;;  %v1927_v52 = vmul.f32 %v1897_v29, %v3432_v14  ;;  %1961 = vmatprep.subr.bf16.mxu1 %v1937_v32 }
 0x85c   : > { %1962 = vmatpush1.bf16.msra.mxu1 %v1936_v31  ;;  %v1899_v61 = vpop.permute.xlu0 %1898 }
 0x85d   : > { %v1938_v50 = vpack.c.bf16 %v1926_v51, %v1924_v30  ;;  %v1901_v38 = vpop.permute.xlu1 %1900  ;;  %v1939_v4 = vpack.c.bf16 %v1927_v52, %v1925_v60 }
 0x85e   : > { %v1902_v55 = vsel %vm794_vm6, %v1899_v61, %v1901_v38  ;;  %v1903_v11 = vsel %vm794_vm6, %v1901_v38, %v1899_v61 }
 0x85f   : > { %1963 = vmatprep.subr.bf16.mxu1 %v1939_v4  ;;  %v1928_v35 = vmul.f32 %v1902_v55, %v3452_v34  ;;  %v1929_v56 = vmul.f32 %v1903_v11, %v3457_v20 }
 0x860   : > { %v1905_v44 = vpop.permute.xlu0 %1904  ;;  %1964 = vmatpush1.bf16.msra.mxu1 %v1938_v50 }
 0x861   : > { %v1907_v13 = vpop.permute.xlu1 %1906 }
 0x862   : > { %v1908_v14 = vsel %vm807_vm7, %v1905_v44, %v1907_v13  ;;  %v1909_v15 = vsel %vm807_vm7, %v1907_v13, %v1905_v44 }
 0x863   : > { %v1930_v16 = vmul.f32 %v1908_v14, %v3466_v39  ;;  %v1931_v62 = vmul.f32 %v1909_v15, %v3471_v40 }
 0x864   : > { %v1911_v9 = vpop.permute.xlu0 %1910 }
 0x865   : > { %v1940_v5 = vpack.c.bf16 %v1930_v16, %v1928_v35  ;;  %v1913_v63 = vpop.permute.xlu1 %1912  ;;  %v1941_v0 = vpack.c.bf16 %v1931_v62, %v1929_v56 }
 0x866   : > { %v1914_v7 = vsel %vm820_vm8, %v1911_v9, %v1913_v63  ;;  %v1915_v8 = vsel %vm820_vm8, %v1913_v63, %v1911_v9  ;;  %v2757_v9 = vld [vmem:[#allocation3 + $0x8] sm:$0xff] }
 0x867   : > { %v1932_v45 = vmul.f32 %v1914_v7, %v3484_v2  ;;  %v1933_v34 = vmul.f32 %v1915_v8, %v3489_v3  ;;  %1965 = vmatprep.subr.bf16.mxu1 %v1941_v0 }
 0x868   : > { %1966 = vmatpush1.bf16.msra.mxu1 %v1940_v5 }
 0x869   : > { %v1942_v20 = vpack.c.bf16 %v1932_v45, %v1932_v45  ;;  %v1943_v39 = vpack.c.bf16 %v1933_v34, %v1933_v34  ;;  %v2077_v45 = vld [vmem:[%s4135_s15] sm:$0xf] }
 0x86b   : > { %2520 = vmatprep.subr.msk.bf16.mxu1 %vm1073_vm9, %v1943_v39  ;;  %v1954_v40 = vsel %vm1073_vm9, %v1942_v20, 0 }
 0x86c   : > { %1968 = vmatpush1.bf16.msra.mxu1 %v1954_v40 }
 0x86f   : > { %2521 = vmatmul.mubr.msk.bf16.vlgmr.msra.gmra.mrb[32].mxu1 %vm1253_vm11, %v1944_v12 }
 0x870   : > { %2051 = vmatprep.mubr.bf16.mxu1 %v2807_v10 }
 0x875   : > { %v1948_v2 = vpop.permute.xlu0 %1947 }
 0x876   : > { %v1732_v48 = vpop.permute.xlu1 %1731 }
 0x877   : > { %v1816_v28 = vadd.f32 %v3815_v53, %v1732_v48  ;;  %v1818_v23 = vadd.f32 %v3817_v17, %v1732_v48 }
 0x879   : > { %v1747_v3 = vpop.permute.xlu0 %1746 }
 0x87a   : > { %v1832_v47 = vadd.f32 %v3870_v21, %v1747_v3  ;;  %v1834_v1 = vadd.f32 %v3875_v43, %v1747_v3  ;;  %v2000_v21 = vld [vmem:[%s4131_s11] sm:$0xf]  ;;  %v1737_v32 = vpop.permute.xlu1 %1736 }
 0x87b   : > { %v1822_v30 = vadd.f32 %v3819_v19, %v1737_v32  ;;  %v1824_v60 = vadd.f32 %v3821_v6, %v1737_v32  ;;  %v2756_v19 = vld [vmem:[#allocation3] sm:$0xff] }
 0x87c   : > { %v1852_v25 = vadd.f32 %v1832_v47, %v1816_v28  ;;  %v1853_v59 = vadd.f32 %v1834_v1, %v1818_v23 }
 0x87d   : > { %v2008_v33 = vpop.permute.xlu0 %2007 }
 0x87e   : > { %v2518_v43 = vmul.f32 -1.442695, %v1852_v25  ;;  %v2519_v58 = vmul.f32 -1.442695, %v1853_v59  ;;  %v2083_v34 = vpop.permute.xlu1 %2082 }
 0x881   : > { %v2143_v25 = vpop.permute.xlu0 %2142 }
 0x942   : > { %v1993_v57 = vpop.f32.mrb[32].mxu1 }
 0x943   : > { %v1994_v22 = vadd.f32 %v1993_v57, %v1948_v2  ;;  %v1995_v24 = vpop.f32.mrb[33].mxu1 }
 0x944   : > { %v1996_v26 = vadd.f32 %v1995_v24, %v1948_v2  ;;  %v1997_v36 = vpop.f32.mrb[34].mxu1 }
 0x945   : > { %2722 = vtanh.f32 %v1994_v22  ;;  %v1998_v37 = vpop.f32.mrb[35].mxu1 }
 0x946   : > { %2724 = vtanh.f32 %v1996_v26 }
 0x947   : > { %2726 = vpow2.f32 %v2518_v43 }
 0x948   : > { %2728 = vpow2.f32 %v2519_v58 }
 0x94f   : > { %v2723_v41 = vpop.eup %2722 }
 0x950   : > { %v2725_v42 = vpop.eup %2724  ;;  %v2003_v27 = vpack.c.bf16 %v2723_v41, %v2723_v41 }
 0x951   : > { %v2004_v53 = vpack.c.bf16 %v2725_v42, %v2725_v42  ;;  %v2727_v49 = vpop.eup %2726  ;;  %v2076_v42 = vld [vmem:[%s4138_s18 + $0x10] sm:$0x3] }
 0x952   : > { %v2014_v17 = vsel %vm1073_vm9, %v2003_v27, 0  ;;  %v2729_v54 = vpop.eup %2728  ;;  %v1860_v31 = vadd.f32 1.0, %v2727_v49 }
 0x953   : > { %2522 = vmatprep.subr.msk.bf16.mxu1 %vm1073_vm9, %v2004_v53  ;;  %v1861_v46 = vadd.f32 1.0, %v2729_v54  ;;  %v2199_v54 = vld [vmem:[%s4134_s14 + $0x10] sm:$0xff] }
 0x954   : > { %2020 = vmatpush1.bf16.msra.mxu1 %v2014_v17  ;;  %2730 = vrcp.f32 %v1860_v31  ;;  %v2197_v17 = vld [vmem:[%s4134_s14] sm:$0xff]  ;;  %v2200_v31 = vld [vmem:[%s4134_s14 + $0x18] sm:$0xff] }
 0x955   : > { %2732 = vrcp.f32 %v1861_v46 }
 0x957   : > { %2523 = vmatmul.mubr.msk.bf16.vlgmr.msra.gmra.mrb[36].mxu1 %vm1314_vm12, %v2000_v21  ;;  %v2198_v21 = vld [vmem:[%s4134_s14 + $0x8] sm:$0xff] }
 0x958   : > { %2126 = vmatprep.mubr.bf16.mxu1 %v2807_v10 }
 0x95e   : > { %v2731_v11 = vpop.eup %2730 }
 0x95f   : > { %v2733_v44 = vpop.eup %2732  ;;  %v2064_v13 = vsub.f32 1.0, %v2731_v11  ;;  %v2068_v16 = vmul.f32 %v2756_v19, %v2731_v11 }
 0x960   : > { %v2065_v15 = vsub.f32 1.0, %v2733_v44  ;;  %v2069_v5 = vmul.f32 %v2757_v9, %v2733_v44 }
 0xa2a   : > { %v2053_v29 = vpop.f32.mrb[36].mxu1 }
 0xa2b   : > { %v2054_v51 = vadd.f32 %v2053_v29, %v2008_v33  ;;  %v2055_v52 = vpop.f32.mrb[37].mxu1 }
 0xa2c   : > { %v2056_v61 = vadd.f32 %v2055_v52, %v2008_v33  ;;  %v2057_v50 = vpop.f32.mrb[38].mxu1 }
 0xa2d   : > { %v2060_v38 = vadd.f32 %v2054_v51, %v1822_v30  ;;  %v2058_v4 = vpop.f32.mrb[39].mxu1 }
 0xa2e   : > { %v2061_v55 = vadd.f32 %v2056_v61, %v1824_v60  ;;  %v2201_v4 = vld [vmem:[%s4134_s14 + $0x20] sm:$0xff] }
 0xa2f   : > { %2734 = vtanh.f32 %v2060_v38 }
 0xa30   : > { %2736 = vtanh.f32 %v2061_v55  ;;  %v2202_v55 = vld [vmem:[%s4134_s14 + $0x28] sm:$0xff] }
 0xa39   : > { %v2735_v14 = vpop.eup %2734 }
 0xa3a   : > { %v2737_v35 = vpop.eup %2736  ;;  %v2066_v56 = vmul.f32 %v2735_v14, %v2064_v13  ;;  %v2203_v14 = vld [vmem:[%s4134_s14 + $0x30] sm:$0xff] }
 0xa3b   : > { %v2067_v62 = vmul.f32 %v2737_v35, %v2065_v15  ;;  %v2204_v15 = vld [vmem:[%s4134_s14 + $0x38] sm:$0xff] }
 0xa3c   : > { %v2070_v6 = vadd.f32 %v2068_v16, %v2066_v56 }
 0xa3d   : > { %v2071_v63 = vadd.f32 %v2069_v5, %v2067_v62 }
 0xa3e   : > { %2072 = vst [vmem:[#allocation3] sm:$0xff] %v2070_v6  ;;  %v2078_v0 = vpack.c.bf16 %v2070_v6, %v2070_v6  ;;  %v2205_v6 = vld [vmem:[%s4134_s14 + $0x40] sm:$0xff] }
 0xa3f   : > { %2073 = vst [vmem:[#allocation3 + $0x8] sm:$0xff] %v2071_v63  ;;  %v2079_v7 = vpack.c.bf16 %v2071_v63, %v2071_v63 }
 0xa40   : > { %v2089_v8 = vsel %vm1073_vm9, %v2078_v0, 0  ;;  %v2207_v0 = vld [vmem:[%s4134_s14 + $0x50] sm:$0xff] }
 0xa41   : > { %2524 = vmatprep.subr.msk.bf16.mxu1 %vm1073_vm9, %v2079_v7  ;;  %v2208_v7 = vld [vmem:[%s4134_s14 + $0x58] sm:$0xff] }
 0xa42   : > { %2095 = vmatpush1.bf16.msra.mxu1 %v2089_v8  ;;  %v2206_v8 = vld [vmem:[%s4134_s14 + $0x48] sm:$0xff] }
 0xa45   : > { %2525 = vmatmul.mubr.msk.bf16.vlgmr.msra.gmra.mrb[40].mxu1 %vm1314_vm12, %v2077_v45 }
 0xa46   : > { %2186 = vmatprep.mubr.bf16.mxu1 %v2807_v10  ;;  %v2137_v10 = vld [vmem:[%s4136_s16] sm:$0xf] }
 0xb18   : > { %v2128_v20 = vpop.f32.mrb[40].mxu1 }
 0xb19   : > { %v2129_v39 = vadd.f32 %v2128_v20, %v2083_v34  ;;  %v2130_v40 = vpop.f32.mrb[41].mxu1 }
 0xb1a   : > { %v2131_v12 = vadd.f32 %v2130_v40, %v2083_v34  ;;  %v2132_v2 = vpop.f32.mrb[42].mxu1 }
 0xb1b   : > { %2738 = vtanh.f32 %v2129_v39  ;;  %v2133_v48 = vpop.f32.mrb[43].mxu1 }
 0xb1c   : > { %2740 = vtanh.f32 %v2131_v12 }
 0xb25   : > { %v2739_v3 = vpop.eup %2738 }
 0xb26   : > { %v2741_v28 = vpop.eup %2740  ;;  %v2138_v23 = vpack.c.bf16 %v2739_v3, %v2739_v3 }
 0xb27   : > { %v2139_v47 = vpack.c.bf16 %v2741_v28, %v2741_v28 }
 0xb28   : > { %v2149_v1 = vsel %vm1073_vm9, %v2138_v23, 0 }
 0xb29   : > { %2526 = vmatprep.subr.msk.bf16.mxu1 %vm1073_vm9, %v2139_v47 }
 0xb2a   : > { %2155 = vmatpush1.bf16.msra.mxu1 %v2149_v1 }
 0xb2d   : > { %2527 = vmatmul.mubr.msk.bf16.vlgmr.msra.gmra.mrb[44].mxu1 %vm1314_vm12, %v2137_v10  ;;  %v2209_v10 = vld [vmem:[%s4134_s14 + $0x60] sm:$0xff] }
 0xc00   : > { %v2188_v59 = vpop.f32.mrb[44].mxu1 }
 0xc01   : > { %v2189_v57 = vadd.f32 %v2188_v59, %v2143_v25  ;;  %v2190_v22 = vpop.f32.mrb[45].mxu1 }
 0xc02   : > { %v2191_v24 = vadd.f32 %v2190_v22, %v2143_v25  ;;  %v2192_v26 = vpop.f32.mrb[46].mxu1  ;;  %v2210_v25 = vld [vmem:[%s4134_s14 + $0x68] sm:$0xff] }
 0xc03   : > { %2742 = vtanh.f32 %v2189_v57  ;;  %v2193_v36 = vpop.f32.mrb[47].mxu1  ;;  %v2212_v26 = vld [vmem:[%s4134_s14 + $0x78] sm:$0xff] }
 0xc04   : > { %2744 = vtanh.f32 %v2191_v24  ;;  %v2211_v24 = vld [vmem:[%s4134_s14 + $0x70] sm:$0xff] }
 0xc0d   : > { %v3971_v37 = vpop.eup %2742 }
 0xc0e   : > { %v3973_v41 = vpop.eup %2744  ;;  %2215 = vrot.lane.b32.xlu1 %v3971_v37, %s4188_s19  ;;  %v2271_v12 = vmul.f32 %v3971_v37, %v2205_v6 }
 0xc0f   : > { %2217 = vrot.lane.b32.xlu0 %v3973_v41, %s4188_s19  ;;  %v2272_v3 = vmul.f32 %v3973_v41, %v2206_v8 }
 0xc12   : > { %2221 = vrot.lane.b32.xlu1 %v3971_v37, %s4189_s30 }
 0xc13   : > { %2223 = vrot.lane.b32.xlu0 %v3973_v41, %s4189_s30 }
 0xc16   : > { %2227 = vrot.lane.b32.xlu1 %v3971_v37, %s4182_s27 }
 0xc17   : > { %2229 = vrot.lane.b32.xlu0 %v3973_v41, %s4182_s27 }
 0xc1a   : > { %2233 = vrot.lane.b32.xlu1 %v3971_v37, %s4183_s28 }
 0xc1b   : > { %2235 = vrot.lane.b32.xlu0 %v3973_v41, %s4183_s28 }
 0xc1e   : > { %2239 = vrot.lane.b32.xlu1 %v3971_v37, %s4184_s29 }
 0xc1f   : > { %2241 = vrot.lane.b32.xlu0 %v3973_v41, %s4184_s29 }
 0xc22   : > { %2245 = vrot.lane.b32.xlu1 %v3971_v37, %s4185_s20 }
 0xc23   : > { %2247 = vrot.lane.b32.xlu0 %v3973_v41, %s4185_s20 }
 0xc26   : > { %2251 = vrot.lane.b32.xlu1 %v3971_v37, %s4186_s21 }
 0xc27   : > { %2253 = vrot.lane.b32.xlu0 %v3973_v41, %s4186_s21 }
 0xc2a   : > { %2257 = vrot.lane.b32.xlu1 %v3971_v37, %s4187_s3 }
 0xc2b   : > { %2259 = vrot.lane.b32.xlu0 %v3973_v41, %s4187_s3 }
 0xc2e   : > { %2294 = vperm.xlu1 %2627, %v2076_v42  }
 0xc80   : > { %v2216_v27 = vpop.permute.xlu1 %2215 }
 0xc81   : > { %v2218_v53 = vpop.permute.xlu0 %2217 }
 0xc82   : > { %v2219_v43 = vsel %vm729_vm1, %v2216_v27, %v2218_v53  ;;  %v2220_v58 = vsel %vm729_vm1, %v2218_v53, %v2216_v27 }
 0xc83   : > { %v2263_v29 = vmul.f32 %v2220_v58, %v2197_v17  ;;  %v2264_v30 = vmul.f32 %v2219_v43, %v2198_v21  ;;  %v2213_v43 = vld [vmem:[%s4134_s14 + $0x80] sm:$0xff]  ;;  %v2214_v58 = vld [vmem:[%s4134_s14 + $0x88] sm:$0xff] }
 0xc84   : > { %v2222_v49 = vpop.permute.xlu1 %2221 }
 0xc85   : > { %v2224_v46 = vpop.permute.xlu0 %2223 }
 0xc86   : > { %v2225_v32 = vsel %vm742_vm2, %v2222_v49, %v2224_v46  ;;  %v2226_v33 = vsel %vm742_vm2, %v2224_v46, %v2222_v49 }
 0xc87   : > { %v2265_v51 = vmul.f32 %v2226_v33, %v2199_v54  ;;  %v2266_v52 = vmul.f32 %v2225_v32, %v2200_v31 }
 0xc88   : > { %v2228_v60 = vpop.permute.xlu1 %2227 }
 0xc89   : > { %v2281_v61 = vpack.c.bf16 %v2265_v51, %v2263_v29  ;;  %v2230_v50 = vpop.permute.xlu0 %2229  ;;  %v2282_v38 = vpack.c.bf16 %v2266_v52, %v2264_v30 }
 0xc8a   : > { %v2231_v11 = vsel %vm755_vm3, %v2228_v60, %v2230_v50  ;;  %v2232_v44 = vsel %vm755_vm3, %v2230_v50, %v2228_v60  ;;  %v2291_v60 = vld [vmem:[%s4190_s6] sm:$0x1] }
 0xc8b   : > { %2306 = vmatprep.subr.bf16.mxu0 %v2282_v38  ;;  %v2267_v16 = vmul.f32 %v2232_v44, %v2201_v4  ;;  %v2268_v62 = vmul.f32 %v2231_v11, %v2202_v55 }
 0xc8c   : > { %2307 = vmatpush1.bf16.msra.mxu0 %v2281_v61  ;;  %v2234_v13 = vpop.permute.xlu1 %2233 }
 0xc8d   : > { %v2236_v35 = vpop.permute.xlu0 %2235 }
 0xc8e   : > { %v2237_v56 = vsel %vm768_vm4, %v2234_v13, %v2236_v35  ;;  %v2238_v19 = vsel %vm768_vm4, %v2236_v35, %v2234_v13 }
 0xc8f   : > { %v2269_v9 = vmul.f32 %v2238_v19, %v2203_v14  ;;  %v2270_v5 = vmul.f32 %v2237_v56, %v2204_v15 }
 0xc90   : > { %v2240_v63 = vpop.permute.xlu1 %2239 }
 0xc91   : > { %v2283_v45 = vpack.c.bf16 %v2269_v9, %v2267_v16  ;;  %v2242_v34 = vpop.permute.xlu0 %2241  ;;  %v2284_v20 = vpack.c.bf16 %v2270_v5, %v2268_v62 }
 0xc92   : > { %v2243_v39 = vsel %vm781_vm5, %v2240_v63, %v2242_v34  ;;  %v2244_v40 = vsel %vm781_vm5, %v2242_v34, %v2240_v63 }
 0xc93   : > { %v2273_v2 = vmul.f32 %v2243_v39, %v2207_v0  ;;  %v2274_v48 = vmul.f32 %v2244_v40, %v2208_v7  ;;  %2308 = vmatprep.subr.bf16.mxu0 %v2284_v20 }
 0xc94   : > { %2309 = vmatpush1.bf16.msra.mxu0 %v2283_v45  ;;  %v2246_v28 = vpop.permute.xlu1 %2245 }
 0xc95   : > { %v2285_v23 = vpack.c.bf16 %v2273_v2, %v2271_v12  ;;  %v2248_v47 = vpop.permute.xlu0 %2247  ;;  %v2286_v1 = vpack.c.bf16 %v2274_v48, %v2272_v3 }
 0xc96   : > { %v2249_v59 = vsel %vm794_vm6, %v2246_v28, %v2248_v47  ;;  %v2250_v57 = vsel %vm794_vm6, %v2248_v47, %v2246_v28 }
 0xc97   : > { %2310 = vmatprep.subr.bf16.mxu0 %v2286_v1  ;;  %v2275_v42 = vmul.f32 %v2249_v59, %v2209_v10  ;;  %v2276_v27 = vmul.f32 %v2250_v57, %v2210_v25 }
 0xc98   : > { %v2252_v22 = vpop.permute.xlu1 %2251  ;;  %2311 = vmatpush1.bf16.msra.mxu0 %v2285_v23 }
 0xc99   : > { %v2254_v36 = vpop.permute.xlu0 %2253 }
 0xc9a   : > { %v2255_v37 = vsel %vm807_vm7, %v2252_v22, %v2254_v36  ;;  %v2256_v41 = vsel %vm807_vm7, %v2254_v36, %v2252_v22 }
 0xc9b   : > { %v2277_v53 = vmul.f32 %v2255_v37, %v2211_v24  ;;  %v2278_v17 = vmul.f32 %v2256_v41, %v2212_v26 }
 0xc9c   : > { %v2258_v21 = vpop.permute.xlu1 %2257 }
 0xc9d   : > { %v2287_v49 = vpack.c.bf16 %v2277_v53, %v2275_v42  ;;  %v2260_v54 = vpop.permute.xlu0 %2259  ;;  %v2288_v31 = vpack.c.bf16 %v2278_v17, %v2276_v27 }
 0xc9e   : > { %v2261_v46 = vsel %vm820_vm8, %v2258_v21, %v2260_v54  ;;  %v2262_v32 = vsel %vm820_vm8, %v2260_v54, %v2258_v21 }
 0xc9f   : > { %v2279_v33 = vmul.f32 %v2261_v46, %v2213_v43  ;;  %v2280_v29 = vmul.f32 %v2262_v32, %v2214_v58  ;;  %2312 = vmatprep.subr.bf16.mxu0 %v2288_v31 }
 0xca0   : > { %2313 = vmatpush1.bf16.msra.mxu0 %v2287_v49 }
 0xca1   : > { %v2289_v30 = vpack.c.bf16 %v2279_v33, %v2279_v33  ;;  %v2290_v51 = vpack.c.bf16 %v2280_v29, %v2280_v29 }
 0xca3   : > { %2528 = vmatprep.subr.msk.bf16.mxu0 %vm1073_vm9, %v2290_v51  ;;  %v2301_v52 = vsel %vm1073_vm9, %v2289_v30, 0 }
 0xca4   : > { %2315 = vmatpush1.bf16.msra.mxu0 %v2301_v52 }
 0xca7   : > { %2529 = vmatmul.mubr.msk.bf16.vlgmr.msra.gmra.mrb[24].mxu0 %vm1253_vm11, %v2291_v60 }
 0xcad   : > { %v2295_v61 = vpop.permute.xlu1 %2294 }
 0xd7a   : > { %v2340_v18 = vpop.f32.mrb[24].mxu0 }
 0xd7b   : > { %v2341_v50 = vadd.f32 %v2340_v18, %v2295_v61  ;;  %v2342_v38 = vpop.f32.mrb[25].mxu0 }
 0xd7c   : > { %v2343_v4 = vadd.f32 %v2342_v38, %v2295_v61  ;;  %v2344_v55 = vpop.f32.mrb[26].mxu0 }
 0xd7d   : > { %v2530_v11 = vmul.f32 -1.442695, %v2341_v50  ;;  %v2345_v44 = vpop.f32.mrb[27].mxu0 }
 0xd7e   : > { %v2531_v13 = vmul.f32 -1.442695, %v2343_v4 }
 0xd7f   : > { %2746 = vpow2.f32 %v2530_v11 }
 0xd80   : > { %2748 = vpow2.f32 %v2531_v13 }
 0xd89   : > { %v2747_v14 = vpop.eup %2746 }
 0xd8a   : > { %v2749_v15 = vpop.eup %2748  ;;  %v2353_v35 = vadd.f32 1.0, %v2747_v14 }
 0xd8b   : > { %v2354_v56 = vadd.f32 1.0, %v2749_v15 }
 0xd8c   : > { %2750 = vrcp.f32 %v2353_v35 }
 0xd8d   : > { %2752 = vrcp.f32 %v2354_v56 }
 0xd96   : > { %v2751_v19 = vpop.eup %2750 }
 0xd97   : > { %v2753_v16 = vpop.eup %2752 }
 0xd98   : > { %v2361_v62 = vcombine.low %v2751_v19, %v2753_v16 }
 0xd9a   : > { %2532 = vst.sshfl [vmem:[%s2944_s17] sm:$0x33 pattern:$0x76325410] %v2361_v62 }
 0xd9b PF: > { %s4191_s26 = sld [smem:[#allocation6_spill]]  ;;  %s4192_s0 = sld [smem:[#allocation4_spill]] }
 0xd9c   : > { %s4193_s30 = sld [smem:[#allocation5_spill]]  ;;  %s4194_s20 = sld [smem:[#allocation7_spill]] }
 0xd9d   : > { %s4195_s21 = smov %s4201_s2 }
 0xda1   : > { %s29_s1 = sadd.s32 1, %s4191_s26  }
 0xda2   : > { %p26_p8 = scmp.ge.s32.totalorder %s29_s1, 8  }
 0xda4   :  { %28 = sbr.rel (!%p26_p8) target bundleno = 8 (0x8), region = 130 }

</bundles_post_ra>
